<compile_context>
chip_gen: v7x
topology: tpu7x:2x2x1
jax: 0.10.0
libtpu: 0.0.40
codegen_flags: <defaults>
</compile_context>

<pallas_src>
import jax
import jax.numpy as jnp
from jax import lax
from jax.experimental import pallas as pl
from jax.experimental.pallas import tpu as pltpu

HIDDEN_SIZE = 120
MID_SIZE = 60
INPUT_SIZE = 1
H_PAD = 128                      # hidden 120 -> 128 lanes (lane aligned)
_HIGHEST = lax.Precision.HIGHEST


def _rnn_mlp_kernel(x_ref,    # SMEM (seq,)    f32 : input scalars x_t
                    w_ref,    # VMEM (256,128) f32 : [0:128]=W_hh^T pad, [128:256]=W_out^T/seq pad
                    s_ref,    # VMEM (8,128)   f32 : row0 W_ih^T, row1 b_rnn,
                              #                      row2 b_out (+1.0 @ lane127),
                              #                      row3 w_fin (+b_fin @ lane127)
                    o_ref):   # VMEM (1,1)     f32 : prediction
    seq_len = x_ref.shape[0]

    wih = s_ref[0:1, :]                      # (1,128) W_ih^T, zero-padded
    b_rnn = s_ref[1:2, :]                    # (1,128) b_ih + b_hh, zero-padded
    whh = w_ref[0:H_PAD, :]                  # (128,128) recurrent weight, loaded once

    # t = 0: h_prev == 0, the recurrent term vanishes.
    h = jnp.tanh(x_ref[0] * wih + b_rnn)
    h_sum = h

    # Fully unrolled recurrence (seq_len is a small static Python int).  The serial
    # chain per step is dot -> add -> tanh; the x_t*wih+b term is independent of h
    # and overlaps on the VPU.  Padded lanes stay exactly 0 (tanh(0)=0) forever.
    for t in range(1, seq_len):
        inp_t = x_ref[t] * wih + b_rnn
        hh = jnp.dot(h, whh, preferred_element_type=jnp.float32, precision=_HIGHEST)
        h = jnp.tanh(hh + inp_t)
        h_sum = h_sum + h

    # Mean over time is folded into W_out (pre-scaled by 1/seq in prepare_params).
    wo = w_ref[H_PAD:2 * H_PAD, :]
    r = jnp.dot(h_sum, wo, preferred_element_type=jnp.float32,
                precision=_HIGHEST) + s_ref[2:3, :]
    r = jnp.maximum(r, 0.0)                  # ReLU; lane 127 is exactly 1.0 (bias trick)

    # Final Linear(60,1) as VPU multiply + XLU lane reduce (no (64,1) MXU matmul).
    # Lane 127 contributes 1.0 * b_fin, i.e. the final bias.
    o_ref[...] = jnp.sum(r * s_ref[3:4, :], axis=-1, keepdims=True)


def prepare_params(params, seq):
    """One-time packing of torch-shaped parameters into two lane-aligned slabs.

    Call this once per (params, seq); do NOT re-run it per forward — this is the
    per-call padding/scatter work the perf review flagged as the dominant cost.
    """
    f32 = jnp.float32
    w_ih = params["w_ih"].astype(f32)                        # (120, 1)
    w_hh = params["w_hh"].astype(f32)                        # (120, 120)
    b_rnn = (params["b_ih"] + params["b_hh"]).astype(f32)    # (120,)
    w_out = params["w_out"].astype(f32)                      # (60, 120)
    b_out = params["b_out"].astype(f32)                      # (60,)
    w_fin = params["w_fin"].astype(f32)                      # (1, 60)
    b_fin = params["b_fin"].astype(f32)                      # (1,)

    # Weight slab: one 128-KiB DMA.  Zero padding keeps the padded hidden lanes at
    # exactly 0 pre-activation and keeps them from reaching the output.
    w_slab = jnp.zeros((2 * H_PAD, H_PAD), f32)
    w_slab = w_slab.at[:HIDDEN_SIZE, :HIDDEN_SIZE].set(w_hh.T)
    w_slab = w_slab.at[H_PAD:H_PAD + HIDDEN_SIZE, :MID_SIZE].set(
        w_out.T * (1.0 / float(seq)))                        # fold mean-over-time

    # Small-operand slab: one 4-KiB DMA.
    s_slab = jnp.zeros((8, H_PAD), f32)
    s_slab = s_slab.at[0, :HIDDEN_SIZE].set(w_ih[:, 0])      # W_ih^T
    s_slab = s_slab.at[1, :HIDDEN_SIZE].set(b_rnn)           # b_ih + b_hh
    s_slab = s_slab.at[2, :MID_SIZE].set(b_out)              # out-layer bias
    s_slab = s_slab.at[3, :MID_SIZE].set(w_fin[0, :])        # final weight (row form)
    # Fold the final bias into the lane reduce: wo column 127 is all-zero, so
    # r[127] = relu(0 + 1.0) = 1.0 and contributes exactly 1.0 * b_fin to the sum.
    s_slab = s_slab.at[2, H_PAD - 1].set(1.0)
    s_slab = s_slab.at[3, H_PAD - 1].set(b_fin[0])

    return {"w_slab": w_slab, "s_slab": s_slab}


@jax.jit
def model_forward(x, time_step, prepared):
    """x: (1, seq, 1) float32; returns (1, 1) float32 like Model.forward(x, time_step)."""
    del time_step  # unused by the torch forward (kept for signature parity)
    assert x.shape[0] == 1 and x.shape[2] == INPUT_SIZE
    seq = x.shape[1]
    x_flat = x.reshape(seq).astype(jnp.float32)              # (seq,) scalars -> SMEM

    smem = pl.BlockSpec(memory_space=pltpu.MemorySpace.SMEM)
    vmem = pl.BlockSpec(memory_space=pltpu.MemorySpace.VMEM)
    return pl.pallas_call(
        _rnn_mlp_kernel,
        out_shape=jax.ShapeDtypeStruct((1, 1), jnp.float32),
        in_specs=[smem, vmem, vmem],
        out_specs=vmem,
    )(x_flat, prepared["w_slab"], prepared["s_slab"])


def reference_forward(x, params):
    """Pure-JAX reference reproducing the torch forward (precision pinned to f32)."""
    seq = x.shape[1]
    h = jnp.zeros((1, HIDDEN_SIZE), jnp.float32)
    outs = []
    for t in range(seq):
        x_t = x[0, t, 0]
        h = jnp.tanh(x_t * params["w_ih"].T
                     + jnp.dot(h, params["w_hh"].T, precision=_HIGHEST)
                     + params["b_ih"] + params["b_hh"])
        outs.append(h)
    r = jnp.mean(jnp.stack(outs, axis=1), axis=1)                          # (1, H)
    r = jax.nn.relu(jnp.dot(r, params["w_out"].T, precision=_HIGHEST) + params["b_out"])
    return jnp.dot(r, params["w_fin"].T, precision=_HIGHEST) + params["b_fin"]   # (1, 1)


def init_params(key):
    """Deterministic init matching the torch parameter shapes (uniform like nn.RNN/Linear)."""
    ks = jax.random.split(key, 8)
    s_rnn = 1.0 / jnp.sqrt(HIDDEN_SIZE)
    s_out = 1.0 / jnp.sqrt(HIDDEN_SIZE)
    s_fin = 1.0 / jnp.sqrt(MID_SIZE)
    u = lambda k, shape, s: jax.random.uniform(k, shape, jnp.float32, -s, s)
    return {
        "w_ih": u(ks[0], (HIDDEN_SIZE, INPUT_SIZE), s_rnn),
        "w_hh": u(ks[1], (HIDDEN_SIZE, HIDDEN_SIZE), s_rnn),
        "b_ih": u(ks[2], (HIDDEN_SIZE,), s_rnn),
        "b_hh": u(ks[3], (HIDDEN_SIZE,), s_rnn),
        "w_out": u(ks[4], (MID_SIZE, HIDDEN_SIZE), s_out),
        "b_out": u(ks[5], (MID_SIZE,), s_out),
        "w_fin": u(ks[6], (1, MID_SIZE), s_fin),
        "b_fin": u(ks[7], (1,), s_fin),
    }


if __name__ == "__main__":
    key = jax.random.PRNGKey(0)
    k_params, k_x = jax.random.split(key)
    params = init_params(k_params)

    SEQ = 8
    x = jax.random.normal(k_x, (1, SEQ, INPUT_SIZE), jnp.float32)
    time_step = jnp.arange(SEQ, dtype=jnp.float32)  # unused, matches torch signature

    prepared = prepare_params(params, SEQ)          # one-time weight packing

    pred = model_forward(x, time_step, prepared)
    pred = jax.block_until_ready(pred)

    ref = reference_forward(x, params)
    assert pred.shape == (1, 1)
    assert jnp.allclose(pred, ref, atol=1e-5, rtol=1e-5), (pred, ref)
    print("KERNEL_OK")
</pallas_src>

<mosaic_0001>
module attributes {stable_mosaic.version = 11 : i64} {
  func.func @_rnn_mlp_kernel(%arg0: memref<8xf32, #tpu.memory_space<smem>>, %arg1: memref<256x128xf32, #tpu.memory_space<vmem>>, %arg2: memref<8x128xf32, #tpu.memory_space<vmem>>, %arg3: memref<1x1xf32, #tpu.memory_space<vmem>>) attributes {dimension_semantics = [], scalar_prefetch = 0 : i64, scratch_operands = 0 : i64, tpu.core_type = #tpu.core_type<tc>} {
    %c0 = arith.constant 0 : index
    %c0_0 = arith.constant 0 : index
    %0 = vector.load %arg2[%c0, %c0_0] : memref<8x128xf32, #tpu.memory_space<vmem>>, vector<1x128xf32>
    %c1 = arith.constant 1 : index
    %c0_1 = arith.constant 0 : index
    %1 = vector.load %arg2[%c1, %c0_1] : memref<8x128xf32, #tpu.memory_space<vmem>>, vector<1x128xf32>
    %c0_2 = arith.constant 0 : index
    %c0_3 = arith.constant 0 : index
    %2 = vector.load %arg1[%c0_2, %c0_3] : memref<256x128xf32, #tpu.memory_space<vmem>>, vector<128x128xf32>
    %c0_4 = arith.constant 0 : index
    %3 = memref.load %arg0[%c0_4] : memref<8xf32, #tpu.memory_space<smem>>
    %4 = vector.broadcast %3 : f32 to vector<1x128xf32>
    %5 = arith.mulf %4, %0 : vector<1x128xf32>
    %6 = arith.addf %5, %1 : vector<1x128xf32>
    %7 = math.tanh %6 : vector<1x128xf32>
    %c1_5 = arith.constant 1 : index
    %8 = memref.load %arg0[%c1_5] : memref<8xf32, #tpu.memory_space<smem>>
    %9 = vector.broadcast %8 : f32 to vector<1x128xf32>
    %10 = arith.mulf %9, %0 : vector<1x128xf32>
    %11 = arith.addf %10, %1 : vector<1x128xf32>
    %cst = arith.constant dense<0.000000e+00> : vector<1x128xf32>
    %12 = tpu.matmul %7, %2, %cst {dimension_numbers = #tpu.dot_dimension_numbers<[1], [0], [0], [1], [0, 0, 1, 1], [], []>, precision = #tpu.contract_precision<fp32>} : vector<1x128xf32>, vector<128x128xf32>, vector<1x128xf32> -> vector<1x128xf32>
    %13 = arith.addf %12, %11 : vector<1x128xf32>
    %14 = math.tanh %13 : vector<1x128xf32>
    %15 = arith.addf %7, %14 : vector<1x128xf32>
    %c2 = arith.constant 2 : index
    %16 = memref.load %arg0[%c2] : memref<8xf32, #tpu.memory_space<smem>>
    %17 = vector.broadcast %16 : f32 to vector<1x128xf32>
    %18 = arith.mulf %17, %0 : vector<1x128xf32>
    %19 = arith.addf %18, %1 : vector<1x128xf32>
    %cst_6 = arith.constant dense<0.000000e+00> : vector<1x128xf32>
    %20 = tpu.matmul %14, %2, %cst_6 {dimension_numbers = #tpu.dot_dimension_numbers<[1], [0], [0], [1], [0, 0, 1, 1], [], []>, precision = #tpu.contract_precision<fp32>} : vector<1x128xf32>, vector<128x128xf32>, vector<1x128xf32> -> vector<1x128xf32>
    %21 = arith.addf %20, %19 : vector<1x128xf32>
    %22 = math.tanh %21 : vector<1x128xf32>
    %23 = arith.addf %15, %22 : vector<1x128xf32>
    %c3 = arith.constant 3 : index
    %24 = memref.load %arg0[%c3] : memref<8xf32, #tpu.memory_space<smem>>
    %25 = vector.broadcast %24 : f32 to vector<1x128xf32>
    %26 = arith.mulf %25, %0 : vector<1x128xf32>
    %27 = arith.addf %26, %1 : vector<1x128xf32>
    %cst_7 = arith.constant dense<0.000000e+00> : vector<1x128xf32>
    %28 = tpu.matmul %22, %2, %cst_7 {dimension_numbers = #tpu.dot_dimension_numbers<[1], [0], [0], [1], [0, 0, 1, 1], [], []>, precision = #tpu.contract_precision<fp32>} : vector<1x128xf32>, vector<128x128xf32>, vector<1x128xf32> -> vector<1x128xf32>
    %29 = arith.addf %28, %27 : vector<1x128xf32>
    %30 = math.tanh %29 : vector<1x128xf32>
    %31 = arith.addf %23, %30 : vector<1x128xf32>
    %c4 = arith.constant 4 : index
    %32 = memref.load %arg0[%c4] : memref<8xf32, #tpu.memory_space<smem>>
    %33 = vector.broadcast %32 : f32 to vector<1x128xf32>
    %34 = arith.mulf %33, %0 : vector<1x128xf32>
    %35 = arith.addf %34, %1 : vector<1x128xf32>
    %cst_8 = arith.constant dense<0.000000e+00> : vector<1x128xf32>
    %36 = tpu.matmul %30, %2, %cst_8 {dimension_numbers = #tpu.dot_dimension_numbers<[1], [0], [0], [1], [0, 0, 1, 1], [], []>, precision = #tpu.contract_precision<fp32>} : vector<1x128xf32>, vector<128x128xf32>, vector<1x128xf32> -> vector<1x128xf32>
    %37 = arith.addf %36, %35 : vector<1x128xf32>
    %38 = math.tanh %37 : vector<1x128xf32>
    %39 = arith.addf %31, %38 : vector<1x128xf32>
    %c5 = arith.constant 5 : index
    %40 = memref.load %arg0[%c5] : memref<8xf32, #tpu.memory_space<smem>>
    %41 = vector.broadcast %40 : f32 to vector<1x128xf32>
    %42 = arith.mulf %41, %0 : vector<1x128xf32>
    %43 = arith.addf %42, %1 : vector<1x128xf32>
    %cst_9 = arith.constant dense<0.000000e+00> : vector<1x128xf32>
    %44 = tpu.matmul %38, %2, %cst_9 {dimension_numbers = #tpu.dot_dimension_numbers<[1], [0], [0], [1], [0, 0, 1, 1], [], []>, precision = #tpu.contract_precision<fp32>} : vector<1x128xf32>, vector<128x128xf32>, vector<1x128xf32> -> vector<1x128xf32>
    %45 = arith.addf %44, %43 : vector<1x128xf32>
    %46 = math.tanh %45 : vector<1x128xf32>
    %47 = arith.addf %39, %46 : vector<1x128xf32>
    %c6 = arith.constant 6 : index
    %48 = memref.load %arg0[%c6] : memref<8xf32, #tpu.memory_space<smem>>
    %49 = vector.broadcast %48 : f32 to vector<1x128xf32>
    %50 = arith.mulf %49, %0 : vector<1x128xf32>
    %51 = arith.addf %50, %1 : vector<1x128xf32>
    %cst_10 = arith.constant dense<0.000000e+00> : vector<1x128xf32>
    %52 = tpu.matmul %46, %2, %cst_10 {dimension_numbers = #tpu.dot_dimension_numbers<[1], [0], [0], [1], [0, 0, 1, 1], [], []>, precision = #tpu.contract_precision<fp32>} : vector<1x128xf32>, vector<128x128xf32>, vector<1x128xf32> -> vector<1x128xf32>
    %53 = arith.addf %52, %51 : vector<1x128xf32>
    %54 = math.tanh %53 : vector<1x128xf32>
    %55 = arith.addf %47, %54 : vector<1x128xf32>
    %c7 = arith.constant 7 : index
    %56 = memref.load %arg0[%c7] : memref<8xf32, #tpu.memory_space<smem>>
    %57 = vector.broadcast %56 : f32 to vector<1x128xf32>
    %58 = arith.mulf %57, %0 : vector<1x128xf32>
    %59 = arith.addf %58, %1 : vector<1x128xf32>
    %cst_11 = arith.constant dense<0.000000e+00> : vector<1x128xf32>
    %60 = tpu.matmul %54, %2, %cst_11 {dimension_numbers = #tpu.dot_dimension_numbers<[1], [0], [0], [1], [0, 0, 1, 1], [], []>, precision = #tpu.contract_precision<fp32>} : vector<1x128xf32>, vector<128x128xf32>, vector<1x128xf32> -> vector<1x128xf32>
    %61 = arith.addf %60, %59 : vector<1x128xf32>
    %62 = math.tanh %61 : vector<1x128xf32>
    %63 = arith.addf %55, %62 : vector<1x128xf32>
    %c128 = arith.constant 128 : index
    %c0_12 = arith.constant 0 : index
    %64 = vector.load %arg1[%c128, %c0_12] : memref<256x128xf32, #tpu.memory_space<vmem>>, vector<128x128xf32>
    %cst_13 = arith.constant dense<0.000000e+00> : vector<1x128xf32>
    %65 = tpu.matmul %63, %64, %cst_13 {dimension_numbers = #tpu.dot_dimension_numbers<[1], [0], [0], [1], [0, 0, 1, 1], [], []>, precision = #tpu.contract_precision<fp32>} : vector<1x128xf32>, vector<128x128xf32>, vector<1x128xf32> -> vector<1x128xf32>
    %c2_14 = arith.constant 2 : index
    %c0_15 = arith.constant 0 : index
    %66 = vector.load %arg2[%c2_14, %c0_15] : memref<8x128xf32, #tpu.memory_space<vmem>>, vector<1x128xf32>
    %67 = arith.addf %65, %66 : vector<1x128xf32>
    %cst_16 = arith.constant 0.000000e+00 : f32
    %68 = vector.broadcast %cst_16 : f32 to vector<1x128xf32>
    %69 = arith.maximumf %67, %68 : vector<1x128xf32>
    %c3_17 = arith.constant 3 : index
    %c0_18 = arith.constant 0 : index
    %70 = vector.load %arg2[%c3_17, %c0_18] : memref<8x128xf32, #tpu.memory_space<vmem>>, vector<1x128xf32>
    %71 = arith.mulf %69, %70 : vector<1x128xf32>
    %cst_19 = arith.constant dense<0.000000e+00> : vector<1xf32>
    %72 = vector.multi_reduction <add>, %71, %cst_19 [1] : vector<1x128xf32> to vector<1xf32>
    %73 = vector.shape_cast %72 : vector<1xf32> to vector<1x1xf32>
    %c0_20 = arith.constant 0 : index
    %c0_21 = arith.constant 0 : index
    %74 = vector.load %arg3[%c0_20, %c0_21] : memref<1x1xf32, #tpu.memory_space<vmem>>, vector<1x1xf32>
    tpu.vector_store %arg3[%c0_20, %c0_21], %73 {strides = array<i32>} : memref<1x1xf32, #tpu.memory_space<vmem>>, vector<1x1xf32>,
    return
  }
}

</mosaic_0001>

<bundles_post_ra>
// kernel: model_forward.1
= control target key start
LH: loop header
LB: loop body
LE: loop exit
PB: predicated region body
PF: predicated region fallthrough
CT: control target
= control target key end

     0   :  { %8 = vsyncpa [#allocation5], 0  ;;  %s10499_s0 = inlined_call_operand.vmem [shape: f32[8], index: 0, kind: input, shape index: {}]   ;;  %s10500_s1 = inlined_call_operand.hbm [shape: f32[256,128], index: 1, kind: input, shape index: {}]   ;;  %s10501_s2 = inlined_call_operand.hbm [shape: f32[8,128], index: 2, kind: input, shape index: {}]   ;;  %s10502_s3 = inlined_call_operand.hbm [shape: f32[1,1], index: 3, kind: output, shape index: {}]  }
   0x1   :  { %9 = vsyncpa [#allocation3], 0 }
   0x2   :  { %10 = vsyncpa [#allocation8], 0 }
   0x3   :  { %11 = vsyncpa [#allocation4], 0  ;;  %s18_s14 = sshll.u32 %s10499_s0, 4  ;;  %s19_s14 = int_to_ptr.vmem [resolvable:$true] %s18_s14 }
   0x4   :  { %s9060_s15 = scalar_lea.vmem %s19_s14, 16  ;;  %p9065_p1 = scmp.lt.s32.totalorder %s19_s14, %s19_s14 }
   0x5   :  { %p9061_p0 = scmp.ne.s32.totalorder %s19_s14, %s9060_s15  ;;  %p9066_p2 = scmp.lt.s32.totalorder %s9060_s15, %s9060_s15 }
   0x7   :  { %p9067_p3 = por %p9066_p2, %p9065_p1 }
   0x9   :  { %p9068_p4 = pnand %p9067_p3, %p9061_p0 }
   0xb   :  { %9071 = shalt.err (!%p9068_p4)
}
   0xc   :  { %s9146_s16 = smov [#allocation2]   ;;  %s9147_s17 = smov [#allocation6]  }
   0xd   :  { %21 = dma.vmem_to_smem %s19_s14, 16, %s9146_s16, [#allocation5]  }
   0xe   :  { %s27_s18 = sshll.u32 %s9147_s17, 4  ;;  %s9072_s21 = scalar_lea.hbm %s10500_s1, 4096  ;;  %s28_s18 = int_to_ptr.vmem [resolvable:$true] %s27_s18 }
   0xf   :  { %p9073_p5 = scmp.ne.s32.totalorder %s10500_s1, %s9072_s21  ;;  %p9076_p6 = scmp.lt.u32.totalorder %s9072_s21, %s10500_s1 }
  0x11   :  { %p9078_p7 = pnand %p9076_p6, %p9073_p5 }
  0x13   :  { %9081 = shalt.err (!%p9078_p7)
}
  0x14   :  { %s9082_s25 = scalar_lea.vmem %s28_s18, 4096  ;;  %p9087_p9 = scmp.lt.s32.totalorder %s28_s18, %s28_s18 }
  0x15   :  { %p9083_p8 = scmp.ne.s32.totalorder %s28_s18, %s9082_s25  ;;  %p9088_p10 = scmp.lt.s32.totalorder %s9082_s25, %s9082_s25 }
  0x17   :  { %p9089_p11 = por %p9088_p10, %p9087_p9 }
  0x19   :  { %p9090_p12 = pnand %p9089_p11, %p9083_p8 }
  0x1b   :  { %9093 = shalt.err (!%p9090_p12)
}
  0x1c   :  { %s9148_s26 = smov 128   ;;  %s9149_s27 = smov 8  }
  0x1d   :  { %33 = dma.hbm_to_vmem [thread:$0]  %s10500_s1, 4096, %s28_s18, [#allocation3], %s9148_s26, %s9148_s26, %s9149_s27  }
  0x1e   :  { %s9150_s30 = smov [#allocation7]   ;;  %s9094_s7 = scalar_lea.hbm %s10501_s2, 128 }
  0x1f   :  { %s40_s4 = sshll.u32 %s9150_s30, 4  ;;  %p9095_p13 = scmp.ne.s32.totalorder %s10501_s2, %s9094_s7  ;;  %s41_s4 = int_to_ptr.vmem [resolvable:$true] %s40_s4 }
  0x20   :  { %p9098_p0 = scmp.lt.u32.totalorder %s9094_s7, %s10501_s2 }
  0x22   :  { %p9100_p1 = pnand %p9098_p0, %p9095_p13 }
  0x24   :  { %9103 = shalt.err (!%p9100_p1)
}
  0x25   :  { %s9104_s12 = scalar_lea.vmem %s41_s4, 128  ;;  %p9109_p3 = scmp.lt.s32.totalorder %s41_s4, %s41_s4 }
  0x26   :  { %p9105_p2 = scmp.ne.s32.totalorder %s41_s4, %s9104_s12  ;;  %p9110_p4 = scmp.lt.s32.totalorder %s9104_s12, %s9104_s12 }
  0x28   :  { %p9111_p5 = por %p9110_p4, %p9109_p3 }
  0x2a   :  { %p9112_p6 = pnand %p9111_p5, %p9105_p2 }
  0x2c   :  { %9115 = shalt.err (!%p9112_p6)
}
  0x2d   :  { %43 = dma.hbm_to_vmem [thread:$0]  %s10501_s2, 128, %s41_s4, [#allocation8]  }
  0x2e   :  { %9138 = dma.done.wait [#allocation5], 16  }
  0x2f   :  { %9139 = vsyncadd [#allocation5], 4294967280 }
  0x30   :  { %9140 = dma.done.wait [#allocation3], 4096  }
  0x31   :  { %9141 = vsyncadd [#allocation3], 4294963200 }
  0x32   :  { %9142 = dma.done.wait [#allocation8], 128  }
  0x33   :  { %9143 = vsyncadd [#allocation8], 4294967168 }
  0x34   :  { %53 = sfence }
  0x35   :  { %v56_v0 = vld [vmem:[#allocation6] sm:$0xff]  ;;  %v57_v1 = vld [vmem:[#allocation6 + $0x8] sm:$0xff]  ;;  %v9202_v2 = vld [vmem:[#allocation6 + $0x10] sm:$0xff]  ;;  %v9151_v3 = vmov 0.0|0.0   ;;  %vm9152_vm0 = vmmov 0   ;;  %v10503_v8 = vmov 0.0  }
  0x36   :  { %7793 = vmatprep.subr.bf16.mxu0 %v9151_v3  ;;  %v82_v4 = vand.u32 4294901760, %v56_v0  ;;  %v85_v5 = vand.u32 4294901760, %v57_v1  ;;  %v9205_v6 = vld [vmem:[#allocation6 + $0x18] sm:$0xff]  ;;  %v88_v7 = vand.u32 4294901760, %v9202_v2  ;;  %6145 = vmatprep.mubr.msk.f32.mxu0 %vm9152_vm0, %v10503_v8  ;;  %v9211_v10 = vld [vmem:[#allocation6 + $0x20] sm:$0xff]  ;;  %v9213_v11 = vld [vmem:[#allocation6 + $0x28] sm:$0xff] }
  0x37   :  { %v91_v9 = vand.u32 4294901760, %v9205_v6  ;;  %7937 = vmatprep.subr.bf16.mxu1 %v9151_v3  ;;  %6355 = vmatprep.mubr.msk.f32.mxu1 %vm9152_vm0, %v10503_v8  ;;  %v94_v14 = vand.u32 4294901760, %v9211_v10  ;;  %v97_v15 = vand.u32 4294901760, %v9213_v11  ;;  %v62_v16 = vld [vmem:[#allocation6 + $0x30] sm:$0xff]  ;;  %v63_v17 = vld [vmem:[#allocation6 + $0x38] sm:$0xff]  ;;  %s72_s2 = sld [smem:[#allocation2]] }
  0x38   :  { %v9218_v12 = vpack.c.bf16 %v85_v5, %v82_v4  ;;  %v100_v19 = vand.u32 4294901760, %v62_v16  ;;  %v103_v20 = vand.u32 4294901760, %v63_v17  ;;  %v64_v21 = vld [vmem:[#allocation6 + $0x40] sm:$0xff]  ;;  %v65_v22 = vld [vmem:[#allocation6 + $0x48] sm:$0xff]  ;;  %v66_v24 = vld [vmem:[#allocation6 + $0x50] sm:$0xff]  ;;  %v9248_v41 = vsub.f32 %v56_v0, %v82_v4  ;;  %s5290_s14 = sld [smem:[#allocation2 + $0x1]] }
  0x39   :  { %v9223_v13 = vpack.c.bf16 %v91_v9, %v88_v7  ;;  %v9231_v18 = vpack.c.bf16 %v97_v15, %v94_v14  ;;  %v9235_v23 = vld [vmem:[#allocation7] sm:$0x1]  ;;  %v67_v25 = vld [vmem:[#allocation6 + $0x58] sm:$0xff]  ;;  %v9238_v26 = vld [vmem:[#allocation7 + $0x1] sm:$0x1]  ;;  %v106_v29 = vand.u32 4294901760, %v64_v21  ;;  %v9253_v43 = vsub.f32 %v57_v1, %v85_v5 }
  0x3a   :  { %7795 = vmatpush3.bf16.msra.mxu0 %v9218_v12  ;;  %7939 = vmatpush3.bf16.msra.mxu1 %v9218_v12  ;;  %v9241_v28 = vpack.c.bf16 %v103_v20, %v100_v19  ;;  %v109_v30 = vand.u32 4294901760, %v65_v22  ;;  %v68_v31 = vld [vmem:[#allocation6 + $0x60] sm:$0xff]  ;;  %v69_v32 = vld [vmem:[#allocation6 + $0x68] sm:$0xff]  ;;  %v112_v34 = vand.u32 4294901760, %v66_v24  ;;  %v115_v35 = vand.u32 4294901760, %v67_v25  ;;  %v70_v36 = vld [vmem:[#allocation6 + $0x70] sm:$0xff] }
  0x3b   :  { %7796 = vmatprep.subr.bf16.mxu0 %v9151_v3  ;;  %7940 = vmatprep.subr.bf16.mxu1 %v9151_v3  ;;  %v71_v37 = vld [vmem:[#allocation6 + $0x78] sm:$0xff]  ;;  %v118_v39 = vand.u32 4294901760, %v68_v31  ;;  %v121_v40 = vand.u32 4294901760, %v69_v32  ;;  %v124_v44 = vand.u32 4294901760, %v70_v36  ;;  %v175_v48 = vand.u32 4294901760, %v9248_v41  ;;  %s5291_s15 = sld [smem:[#allocation2 + $0x2]] }
  0x3c   :  { %v9251_v42 = vpack.c.bf16 %v109_v30, %v106_v29  ;;  %v127_v45 = vand.u32 4294901760, %v71_v37  ;;  %v9258_v46 = vpack.c.bf16 %v115_v35, %v112_v34  ;;  %v9266_v49 = vsub.f32 %v9202_v2, %v88_v7  ;;  %s5292_s16 = sld [smem:[#allocation2 + $0x3]]  ;;  %s5293_s17 = sld [smem:[#allocation2 + $0x4]] }
  0x3d   :  { %v73_v27 = vstv %s72_s2  ;;  %v9260_v47 = vpack.c.bf16 %v121_v40, %v118_v39  ;;  %v9269_v50 = vsub.f32 %v9205_v6, %v91_v9  ;;  %v182_v51 = vand.u32 4294901760, %v9253_v43  ;;  %s5294_s18 = sld [smem:[#allocation2 + $0x5]]  ;;  %s5295_s19 = sld [smem:[#allocation2 + $0x6]] }
  0x3e   :  { %7798 = vmatpush3.bf16.msra.mxu0 %v9223_v13  ;;  %7942 = vmatpush3.bf16.msra.mxu1 %v9223_v13  ;;  %v74_v33 = vmul.f32 %v73_v27, %v9235_v23  ;;  %v9274_v52 = vsub.f32 %v9211_v10, %v94_v14  ;;  %v9277_v53 = vsub.f32 %v9213_v11, %v97_v15  ;;  %v189_v63 = vand.u32 4294901760, %v9266_v49  ;;  %s5296_s20 = sld [smem:[#allocation2 + $0x7]]  ;;  %s9154_s21 = smov [#allocation9]  }
  0x3f   :  { %7799 = vmatprep.subr.bf16.mxu0 %v9151_v3  ;;  %7943 = vmatprep.subr.bf16.mxu1 %v9151_v3  ;;  %v9279_v54 = vsub.f32 %v62_v16, %v100_v19  ;;  %v9283_v55 = vpack.c.bf16 %v127_v45, %v124_v44  ;;  %v9285_v56 = vsub.f32 %v63_v17, %v103_v20  ;;  %v196_v0 = vand.u32 4294901760, %v9269_v50  ;;  %s5279_s22 = sshll.u32 %s9154_s21, 4  ;;  %s5280_s22 = int_to_ptr.vmem [resolvable:$true] %s5279_s22 }
  0x40   :  { %v75_v38 = vadd.f32 %v74_v33, %v9238_v26  ;;  %v9287_v57 = vsub.f32 %v64_v21, %v106_v29  ;;  %v9290_v58 = vsub.f32 %v65_v22, %v109_v30  ;;  %v9292_v59 = vsub.f32 %v66_v24, %v112_v34  ;;  %s9116_s23 = scalar_lea.vmem %s5280_s22, 16  ;;  %s9120_s0 = scalar_lea.vmem %s5280_s22, 32 }
  0x41   :  { %v9294_v60 = vsub.f32 %v67_v25, %v115_v35  ;;  %v9296_v61 = vsub.f32 %v68_v31, %v118_v39  ;;  %v176_v62 = vsub.f32 %v9248_v41, %v175_v48  ;;  %v9301_v1 = vsub.f32 %v69_v32, %v121_v40  ;;  %p9117_p7 = scmp.ne.s32.totalorder %s5280_s22, %s9116_s23  ;;  %p9121_p8 = scmp.lt.s32.totalorder %s5280_s22, %s5280_s22 }
  0x42   :  { %7801 = vmatpush3.bf16.msra.mxu0 %v9231_v18  ;;  %7945 = vmatpush3.bf16.msra.mxu1 %v9231_v18  ;;  %9042 = vtanh.f32 %v75_v38  ;;  %v183_v2 = vsub.f32 %v9253_v43, %v182_v51  ;;  %v203_v4 = vand.u32 4294901760, %v9274_v52  ;;  %v210_v5 = vand.u32 4294901760, %v9277_v53  ;;  %p9122_p9 = scmp.lt.s32.totalorder %s9120_s0, %s9116_s23 }
  0x43   :  { %7802 = vmatprep.subr.bf16.mxu0 %v9151_v3  ;;  %7946 = vmatprep.subr.bf16.mxu1 %v9151_v3  ;;  %v217_v6 = vand.u32 4294901760, %v9279_v54  ;;  %v224_v7 = vand.u32 4294901760, %v9285_v56  ;;  %v231_v9 = vand.u32 4294901760, %v9287_v57  ;;  %v9312_v10 = vsub.f32 %v70_v36, %v124_v44 }
  0x44   :  { %v9314_v11 = vsub.f32 %v71_v37, %v127_v45  ;;  %v238_v15 = vand.u32 4294901760, %v9290_v58  ;;  %v245_v16 = vand.u32 4294901760, %v9292_v59  ;;  %v252_v17 = vand.u32 4294901760, %v9294_v60  ;;  %p9123_p10 = por %p9122_p9, %p9121_p8 }
  0x45   :  { %v259_v19 = vand.u32 4294901760, %v9296_v61  ;;  %v266_v21 = vand.u32 4294901760, %v9301_v1  ;;  %v9327_v22 = vpack.c.bf16 %v182_v51, %v175_v48  ;;  %v9329_v24 = vpack.c.bf16 %v196_v0, %v189_v63 }
  0x46   :  { %7804 = vmatpush3.bf16.msra.mxu0 %v9241_v28  ;;  %7948 = vmatpush3.bf16.msra.mxu1 %v9241_v28  ;;  %v9332_v25 = vpack.c.bf16 %v210_v5, %v203_v4  ;;  %v9334_v27 = vpack.c.bf16 %v224_v7, %v217_v6  ;;  %v9336_v29 = vpack.c.bf16 %v238_v15, %v231_v9  ;;  %v273_v32 = vand.u32 4294901760, %v9312_v10  ;;  %p9124_p11 = pnand %p9123_p10, %p9117_p7 }
  0x47   :  { %7805 = vmatprep.subr.bf16.mxu0 %v9151_v3  ;;  %7949 = vmatprep.subr.bf16.mxu1 %v9151_v3  ;;  %v9338_v30 = vpack.c.bf16 %v252_v17, %v245_v16  ;;  %v280_v33 = vand.u32 4294901760, %v9314_v11  ;;  %v9347_v34 = vpack.c.bf16 %v266_v21, %v259_v19  ;;  %v177_v35 = vand.u32 4294901760, %v176_v62 }
  0x48   :  { %v184_v36 = vand.u32 4294901760, %v183_v2  ;;  %v190_v37 = vsub.f32 %v9266_v49, %v189_v63  ;;  %v197_v38 = vsub.f32 %v9269_v50, %v196_v0  ;;  %v204_v45 = vsub.f32 %v9274_v52, %v203_v4 }
  0x49   :  { %v9354_v40 = vpack.c.bf16 %v280_v33, %v273_v32  ;;  %v211_v63 = vsub.f32 %v9277_v53, %v210_v5  ;;  %v218_v2 = vsub.f32 %v9279_v54, %v217_v6  ;;  %v225_v8 = vsub.f32 %v9285_v56, %v224_v7 }
  0x4a   :  { %7807 = vmatpush3.bf16.msra.mxu0 %v9251_v42  ;;  %7951 = vmatpush3.bf16.msra.mxu1 %v9251_v42  ;;  %v9363_v48 = vpack.c.bf16 %v184_v36, %v177_v35  ;;  %v191_v51 = vand.u32 4294901760, %v190_v37  ;;  %v198_v62 = vand.u32 4294901760, %v197_v38  ;;  %v205_v4 = vand.u32 4294901760, %v204_v45 }
  0x4b   :  { %7808 = vmatprep.subr.bf16.mxu0 %v9151_v3  ;;  %7952 = vmatprep.subr.bf16.mxu1 %v9151_v3  ;;  %v10518_v35 = vmov 0.0   ;;  %v219_v5 = vand.u32 4294901760, %v218_v2  ;;  %v226_v36 = vand.u32 4294901760, %v225_v8  ;;  %v232_v6 = vsub.f32 %v9287_v57, %v231_v9 }
  0x4c   :  { %v9316_v14 = vpop.eup %9042  ;;  %v239_v7 = vsub.f32 %v9290_v58, %v238_v15  ;;  %v253_v8 = vsub.f32 %v9294_v60, %v252_v17  ;;  %vm5267_vm1 = vcmask 1040384   ;;  %vm5271_vm2 = vcmask 0  }
  0x4d   :  { %10517 = vst [vmem:[#allocation14_spill] sm:$0xff] %v9316_v14  ;;  %v9324_v20 = vand.u32 4294901760, %v9316_v14  ;;  %v9381_v38 = vpack.c.bf16 %v226_v36, %v219_v5  ;;  %v9417_v36 = vpack.c.bf16 %v9269_v50, %v9266_v49  ;;  %v9437_v49 = vpack.c.bf16 %v9290_v58, %v9287_v57 }
  0x4e   :  { %7810 = vmatpush3.bf16.msra.mxu0 %v9258_v46  ;;  %7954 = vmatpush3.bf16.msra.mxu1 %v9258_v46  ;;  %v240_v45 = vand.u32 4294901760, %v239_v7  ;;  %v9443_v50 = vpack.c.bf16 %v9294_v60, %v9292_v59  ;;  %v725_v7 = vstv %s5291_s15 }
  0x4f   :  { %7811 = vmatprep.subr.bf16.mxu0 %v9151_v3  ;;  %7955 = vmatprep.subr.bf16.mxu1 %v9151_v3  ;;  %v9343_v31 = vsub.f32 %v9316_v14, %v9324_v20  ;;  %v212_v14 = vand.u32 4294901760, %v211_v63  ;;  %v267_v63 = vsub.f32 %v9301_v1, %v266_v21 }
  0x51   :  { %v10505_v39 = vand.u32 4294901760, %v9343_v31  ;;  %v9376_v37 = vpack.c.bf16 %v212_v14, %v205_v4  ;;  %v260_v14 = vsub.f32 %v9296_v61, %v259_v19  ;;  %v268_v2 = vand.u32 4294901760, %v267_v63 }
  0x52   :  { %7813 = vmatpush3.bf16.msra.mxu0 %v9260_v47  ;;  %7957 = vmatpush3.bf16.msra.mxu1 %v9260_v47  ;;  %v281_v19 = vsub.f32 %v9314_v11, %v280_v33  ;;  %v9410_v33 = vpack.c.bf16 %v9253_v43, %v9248_v41  ;;  %v9425_v41 = vpack.c.bf16 %v9277_v53, %v9274_v52 }
  0x53   :  { %7814 = vmatprep.subr.bf16.mxu0 %v9151_v3  ;;  %7958 = vmatprep.subr.bf16.mxu1 %v9151_v3  ;;  %v165_v44 = vsub.f32 %v9343_v31, %v10505_v39  ;;  %v9370_v39 = vpack.c.bf16 %v198_v62, %v191_v51  ;;  %v246_v51 = vsub.f32 %v9292_v59, %v245_v16  ;;  %v254_v62 = vand.u32 4294901760, %v253_v8 }
  0x54   :  { %v261_v17 = vand.u32 4294901760, %v260_v14  ;;  %v282_v21 = vand.u32 4294901760, %v281_v19  ;;  %v9431_v43 = vpack.c.bf16 %v9285_v56, %v9279_v54  ;;  %v9449_v52 = vpack.c.bf16 %v9301_v1, %v9296_v61 }
  0x55   :  { %v166_v0 = vand.u32 4294901760, %v165_v44  ;;  %v233_v44 = vand.u32 4294901760, %v232_v6  ;;  %v247_v15 = vand.u32 4294901760, %v246_v51  ;;  %v9455_v53 = vpack.c.bf16 %v9314_v11, %v9312_v10 }
  0x56   :  { %7816 = vmatpush3.bf16.msra.mxu0 %v9283_v55  ;;  %7960 = vmatpush3.bf16.msra.mxu1 %v9283_v55  ;;  %v9400_v4 = vpack.c.bf16 %v268_v2, %v261_v17  ;;  %v10519_v54 = vand.u32 4294901760, %v9343_v31  ;;  %v78_v56 = vstv %s5290_s14 }
  0x57   :  { %7817 = vmatprep.subr.bf16.mxu0 %v9151_v3  ;;  %7961 = vmatprep.subr.bf16.mxu1 %v9151_v3  ;;  %v9389_v9 = vpack.c.bf16 %v240_v45, %v233_v44  ;;  %v9395_v16 = vpack.c.bf16 %v254_v62, %v247_v15  ;;  %v79_v57 = vmul.f32 %v78_v56, %v9235_v23  ;;  %v10520_v15 = vld [vmem:[#allocation14_spill] sm:$0xff] }
  0x58   :  { %v726_v44 = vmul.f32 %v725_v7, %v9235_v23 }
  0x59   :  { %6146 = vmatmul.mubr.f32.vlgmr.msra.gmra.mrb[0].mxu0 %v166_v0  ;;  %v274_v0 = vsub.f32 %v9312_v10, %v273_v32  ;;  %v80_v58 = vadd.f32 %v79_v57, %v9238_v26 }
  0x5a   :  { %7819 = vmatpush3.bf16.msra.mxu0 %v9363_v48  ;;  %6180 = vmatprep.mubr.msk.f32.mxu0 %vm9152_vm0, %v10518_v35  ;;  %v727_v45 = vadd.f32 %v726_v44, %v9238_v26  ;;  %v9899_v44 = vld [vmem:[#allocation7 + $0x1] sm:$0x1] }
  0x5b   :  { %7820 = vmatprep.subr.bf16.mxu0 %v9151_v3  ;;  %v275_v5 = vand.u32 4294901760, %v274_v0 }
  0x5d   :  { %v9404_v32 = vpack.c.bf16 %v282_v21, %v275_v5 }
  0x5e   :  { %7822 = vmatpush3.bf16.msra.mxu0 %v9370_v39 }
  0x5f   :  { %7823 = vmatprep.subr.bf16.mxu0 %v9151_v3 }
  0x62   :  { %7825 = vmatpush3.bf16.msra.mxu0 %v9376_v37 }
  0x63   :  { %7826 = vmatprep.subr.bf16.mxu0 %v9151_v3 }
  0x66   :  { %7828 = vmatpush3.bf16.msra.mxu0 %v9381_v38 }
  0x67   :  { %7829 = vmatprep.subr.bf16.mxu0 %v9151_v3 }
  0x6a   :  { %7831 = vmatpush3.bf16.msra.mxu0 %v9389_v9 }
  0x6b   :  { %7832 = vmatprep.subr.bf16.mxu0 %v9151_v3 }
  0x6e   :  { %7834 = vmatpush3.bf16.msra.mxu0 %v9395_v16 }
  0x6f   :  { %7835 = vmatprep.subr.bf16.mxu0 %v9151_v3 }
  0x72   :  { %7837 = vmatpush3.bf16.msra.mxu0 %v9400_v4 }
  0x73   :  { %7838 = vmatprep.subr.bf16.mxu0 %v9151_v3 }
  0x76   :  { %7840 = vmatpush3.bf16.msra.mxu0 %v9404_v32 }
  0x77   :  { %7841 = vmatprep.subr.bf16.mxu0 %v9151_v3 }
  0x79   :  { %6181 = vmatmul.mubr.f32.vlgmr.msra.gmra.mrb[0].mxu0 %v9324_v20 }
  0x7a   :  { %7843 = vmatpush3.bf16.msra.mxu0 %v9410_v33  ;;  %6215 = vmatprep.mubr.msk.f32.mxu0 %vm9152_vm0, %v10518_v35 }
  0x7b   :  { %7844 = vmatprep.subr.bf16.mxu0 %v9151_v3 }
  0x7e   :  { %7846 = vmatpush3.bf16.msra.mxu0 %v9417_v36 }
  0x7f   :  { %7847 = vmatprep.subr.bf16.mxu0 %v9151_v3 }
  0x82   :  { %7849 = vmatpush3.bf16.msra.mxu0 %v9425_v41 }
  0x83   :  { %7850 = vmatprep.subr.bf16.mxu0 %v9151_v3 }
  0x86   :  { %7852 = vmatpush3.bf16.msra.mxu0 %v9431_v43 }
  0x87   :  { %7853 = vmatprep.subr.bf16.mxu0 %v9151_v3 }
  0x8a   :  { %7855 = vmatpush3.bf16.msra.mxu0 %v9437_v49 }
  0x8b   :  { %7856 = vmatprep.subr.bf16.mxu0 %v9151_v3 }
  0x8e   :  { %7858 = vmatpush3.bf16.msra.mxu0 %v9443_v50 }
  0x8f   :  { %7859 = vmatprep.subr.bf16.mxu0 %v9151_v3 }
  0x92   :  { %7861 = vmatpush3.bf16.msra.mxu0 %v9449_v52 }
  0x93   :  { %7862 = vmatprep.subr.bf16.mxu0 %v9151_v3 }
  0x96   :  { %7864 = vmatpush3.bf16.msra.mxu0 %v9455_v53 }
  0x97   :  { %7865 = vmatprep.subr.bf16.mxu0 %v9151_v3 }
  0x99   :  { %6216 = vmatmul.mubr.f32.vlgmr.msra.gmra.mrb[0].mxu0 %v9343_v31 }
  0x9a   :  { %7867 = vmatpush3.bf16.msra.mxu0 %v9218_v12  ;;  %6250 = vmatprep.mubr.msk.f32.mxu0 %vm9152_vm0, %v10518_v35 }
  0x9b   :  { %7868 = vmatprep.subr.bf16.mxu0 %v9151_v3 }
  0x9e   :  { %7870 = vmatpush3.bf16.msra.mxu0 %v9223_v13 }
  0x9f   :  { %7871 = vmatprep.subr.bf16.mxu0 %v9151_v3 }
  0xa2   :  { %7873 = vmatpush3.bf16.msra.mxu0 %v9231_v18 }
  0xa3   :  { %7874 = vmatprep.subr.bf16.mxu0 %v9151_v3 }
  0xa6   :  { %7876 = vmatpush3.bf16.msra.mxu0 %v9241_v28 }
  0xa7   :  { %7877 = vmatprep.subr.bf16.mxu0 %v9151_v3 }
  0xaa   :  { %7879 = vmatpush3.bf16.msra.mxu0 %v9251_v42 }
  0xab   :  { %7880 = vmatprep.subr.bf16.mxu0 %v9151_v3 }
  0xae   :  { %7882 = vmatpush3.bf16.msra.mxu0 %v9258_v46 }
  0xaf   :  { %7883 = vmatprep.subr.bf16.mxu0 %v9151_v3 }
  0xb2   :  { %7885 = vmatpush3.bf16.msra.mxu0 %v9260_v47 }
  0xb3   :  { %7886 = vmatprep.subr.bf16.mxu0 %v9151_v3 }
  0xb6   :  { %7888 = vmatpush3.bf16.msra.mxu0 %v9283_v55 }
  0xb7   :  { %7889 = vmatprep.subr.bf16.mxu0 %v9151_v3 }
  0xb9   :  { %6251 = vmatmul.mubr.f32.vlgmr.msra.gmra.mrb[0].mxu0 %v10519_v54  ;;  %v1372_v54 = vstv %s5292_s16 }
  0xba   :  { %7891 = vmatpush3.bf16.msra.mxu0 %v9327_v22  ;;  %6285 = vmatprep.mubr.msk.f32.mxu0 %vm9152_vm0, %v10518_v35  ;;  %v1373_v56 = vmul.f32 %v1372_v54, %v9235_v23  ;;  %v2019_v23 = vstv %s5293_s17 }
  0xbb   :  { %7892 = vmatprep.subr.bf16.mxu0 %v9151_v3 }
  0xbc   :  { %v1374_v57 = vadd.f32 %v1373_v56, %v9238_v26  ;;  %v9896_v26 = vld [vmem:[#allocation7] sm:$0x1] }
  0xbd   :  { %v2020_v7 = vmul.f32 %v9896_v26, %v2019_v23 }
  0xbe   :  { %7894 = vmatpush3.bf16.msra.mxu0 %v9329_v24 }
  0xbf   :  { %7895 = vmatprep.subr.bf16.mxu0 %v9151_v3 }
  0xc2   :  { %7897 = vmatpush3.bf16.msra.mxu0 %v9332_v25 }
  0xc3   :  { %7898 = vmatprep.subr.bf16.mxu0 %v9151_v3 }
  0xc6   :  { %7900 = vmatpush3.bf16.msra.mxu0 %v9334_v27 }
  0xc7   :  { %7901 = vmatprep.subr.bf16.mxu0 %v9151_v3 }
  0xca   :  { %7903 = vmatpush3.bf16.msra.mxu0 %v9336_v29 }
  0xcb   :  { %7904 = vmatprep.subr.bf16.mxu0 %v9151_v3 }
  0xce   :  { %7906 = vmatpush3.bf16.msra.mxu0 %v9338_v30 }
  0xcf   :  { %7907 = vmatprep.subr.bf16.mxu0 %v9151_v3 }
  0xd2   :  { %7909 = vmatpush3.bf16.msra.mxu0 %v9347_v34 }
  0xd3   :  { %7910 = vmatprep.subr.bf16.mxu0 %v9151_v3 }
  0xd6   :  { %7912 = vmatpush3.bf16.msra.mxu0 %v9354_v40 }
  0xd7   :  { %7913 = vmatprep.subr.bf16.mxu0 %v9151_v3 }
  0xd9   :  { %6286 = vmatmul.mubr.f32.vlgmr.msra.gmra.mrb[0].mxu0 %v9324_v20 }
  0xda   :  { %7915 = vmatpush3.bf16.msra.mxu0 %v9218_v12  ;;  %6320 = vmatprep.mubr.msk.f32.mxu0 %vm9152_vm0, %v10518_v35 }
  0xdb   :  { %7916 = vmatprep.subr.bf16.mxu0 %v9151_v3 }
  0xde   :  { %7918 = vmatpush3.bf16.msra.mxu0 %v9223_v13 }
  0xdf   :  { %7919 = vmatprep.subr.bf16.mxu0 %v9151_v3 }
  0xe2   :  { %7921 = vmatpush3.bf16.msra.mxu0 %v9231_v18 }
  0xe3   :  { %7922 = vmatprep.subr.bf16.mxu0 %v9151_v3 }
  0xe6   :  { %7924 = vmatpush3.bf16.msra.mxu0 %v9241_v28 }
  0xe7   :  { %7925 = vmatprep.subr.bf16.mxu0 %v9151_v3 }
  0xea   :  { %7927 = vmatpush3.bf16.msra.mxu0 %v9251_v42 }
  0xeb   :  { %7928 = vmatprep.subr.bf16.mxu0 %v9151_v3 }
  0xee   :  { %7930 = vmatpush3.bf16.msra.mxu0 %v9258_v46 }
  0xef   :  { %7931 = vmatprep.subr.bf16.mxu0 %v9151_v3 }
  0xf2   :  { %7933 = vmatpush3.bf16.msra.mxu0 %v9260_v47 }
  0xf3   :  { %7934 = vmatprep.subr.bf16.mxu0 %v9151_v3 }
  0xf6   :  { %7936 = vmatpush3.bf16.msra.mxu0 %v9283_v55 }
  0xf7   :  { %8081 = vmatprep.subr.bf16.mxu0 %v9151_v3 }
  0xf9   :  { %6321 = vmatmul.mubr.f32.vlgmr.msra.gmra.mrb[0].mxu0 %v9324_v20 }
  0xfa   :  { %8083 = vmatpush3.bf16.msra.mxu0 %v9218_v12  ;;  %6565 = vmatprep.mubr.msk.f32.mxu0 %vm9152_vm0, %v10518_v35 }
  0xfb   :  { %8084 = vmatprep.subr.bf16.mxu0 %v9151_v3 }
  0xfe   :  { %8086 = vmatpush3.bf16.msra.mxu0 %v9223_v13 }
  0xff   :  { %8087 = vmatprep.subr.bf16.mxu0 %v9151_v3 }
 0x102   :  { %8089 = vmatpush3.bf16.msra.mxu0 %v9231_v18 }
 0x103   :  { %8090 = vmatprep.subr.bf16.mxu0 %v9151_v3 }
 0x106   :  { %8092 = vmatpush3.bf16.msra.mxu0 %v9241_v28 }
 0x107   :  { %8093 = vmatprep.subr.bf16.mxu0 %v9151_v3 }
 0x10a   :  { %8095 = vmatpush3.bf16.msra.mxu0 %v9251_v42 }
 0x10b   :  { %8096 = vmatprep.subr.bf16.mxu0 %v9151_v3 }
 0x10e   :  { %8098 = vmatpush3.bf16.msra.mxu0 %v9258_v46 }
 0x10f   :  { %8099 = vmatprep.subr.bf16.mxu0 %v9151_v3 }
 0x112   :  { %8101 = vmatpush3.bf16.msra.mxu0 %v9260_v47 }
 0x113   :  { %8102 = vmatprep.subr.bf16.mxu0 %v9151_v3 }
 0x116   :  { %8104 = vmatpush3.bf16.msra.mxu0 %v9283_v55 }
 0x117   :  { %8105 = vmatprep.subr.bf16.mxu0 %v9151_v3 }
 0x1cc   :  { %v718_v59 = vpop.f32.mrb[0].mxu0 }
 0x1cd   :  { %v8945_v60 = vadd.f32 %v718_v59, %v80_v58  ;;  %v6322_v61 = vpop.f32.mrb[1].mxu0 }
 0x1cf   :  { %9044 = vtanh.f32 %v8945_v60 }
 0x1d9   :  { %v9539_v1 = vpop.eup %9044 }
 0x1da   :  { %v9542_v10 = vand.u32 4294901760, %v9539_v1  ;;  %v723_v62 = vadd.f32 %v9539_v1, %v10520_v15 }
 0x1dc   :  { %v810_v11 = vsub.f32 %v9539_v1, %v9542_v10 }
 0x1de   :  { %v811_v20 = vand.u32 4294901760, %v810_v11 }
 0x1e0   :  { %v812_v31 = vsub.f32 %v810_v11, %v811_v20 }
 0x1e2   :  { %v813_v6 = vand.u32 4294901760, %v812_v31 }
 0x1e4   :  { %6356 = vmatmul.mubr.f32.vlgmr.msra.gmra.mrb[0].mxu1 %v813_v6 }
 0x1e5   :  { %7963 = vmatpush3.bf16.msra.mxu1 %v9363_v48  ;;  %6390 = vmatprep.mubr.msk.f32.mxu1 %vm9152_vm0, %v10518_v35 }
 0x1e6   :  { %7964 = vmatprep.subr.bf16.mxu1 %v9151_v3 }
 0x1e9   :  { %7966 = vmatpush3.bf16.msra.mxu1 %v9370_v39 }
 0x1ea   :  { %7967 = vmatprep.subr.bf16.mxu1 %v9151_v3 }
 0x1ed   :  { %7969 = vmatpush3.bf16.msra.mxu1 %v9376_v37 }
 0x1ee   :  { %7970 = vmatprep.subr.bf16.mxu1 %v9151_v3 }
 0x1f1   :  { %7972 = vmatpush3.bf16.msra.mxu1 %v9381_v38 }
 0x1f2   :  { %7973 = vmatprep.subr.bf16.mxu1 %v9151_v3 }
 0x1f5   :  { %7975 = vmatpush3.bf16.msra.mxu1 %v9389_v9 }
 0x1f6   :  { %7976 = vmatprep.subr.bf16.mxu1 %v9151_v3 }
 0x1f9   :  { %7978 = vmatpush3.bf16.msra.mxu1 %v9395_v16 }
 0x1fa   :  { %7979 = vmatprep.subr.bf16.mxu1 %v9151_v3 }
 0x1fd   :  { %7981 = vmatpush3.bf16.msra.mxu1 %v9400_v4 }
 0x1fe   :  { %7982 = vmatprep.subr.bf16.mxu1 %v9151_v3 }
 0x201   :  { %7984 = vmatpush3.bf16.msra.mxu1 %v9404_v32 }
 0x202   :  { %7985 = vmatprep.subr.bf16.mxu1 %v9151_v3 }
 0x204   :  { %6391 = vmatmul.mubr.f32.vlgmr.msra.gmra.mrb[0].mxu1 %v9542_v10 }
 0x205   :  { %7987 = vmatpush3.bf16.msra.mxu1 %v9410_v33  ;;  %6425 = vmatprep.mubr.msk.f32.mxu1 %vm9152_vm0, %v10518_v35 }
 0x206   :  { %7988 = vmatprep.subr.bf16.mxu1 %v9151_v3 }
 0x209   :  { %7990 = vmatpush3.bf16.msra.mxu1 %v9417_v36 }
 0x20a   :  { %7991 = vmatprep.subr.bf16.mxu1 %v9151_v3 }
 0x20d   :  { %7993 = vmatpush3.bf16.msra.mxu1 %v9425_v41 }
 0x20e   :  { %7994 = vmatprep.subr.bf16.mxu1 %v9151_v3 }
 0x211   :  { %7996 = vmatpush3.bf16.msra.mxu1 %v9431_v43 }
 0x212   :  { %7997 = vmatprep.subr.bf16.mxu1 %v9151_v3 }
 0x215   :  { %7999 = vmatpush3.bf16.msra.mxu1 %v9437_v49 }
 0x216   :  { %8000 = vmatprep.subr.bf16.mxu1 %v9151_v3 }
 0x219   :  { %8002 = vmatpush3.bf16.msra.mxu1 %v9443_v50 }
 0x21a   :  { %8003 = vmatprep.subr.bf16.mxu1 %v9151_v3 }
 0x21d   :  { %8005 = vmatpush3.bf16.msra.mxu1 %v9449_v52 }
 0x21e   :  { %8006 = vmatprep.subr.bf16.mxu1 %v9151_v3 }
 0x221   :  { %8008 = vmatpush3.bf16.msra.mxu1 %v9455_v53 }
 0x222   :  { %8009 = vmatprep.subr.bf16.mxu1 %v9151_v3 }
 0x224   :  { %6426 = vmatmul.mubr.f32.vlgmr.msra.gmra.mrb[0].mxu1 %v810_v11 }
 0x225   :  { %8011 = vmatpush3.bf16.msra.mxu1 %v9218_v12  ;;  %6460 = vmatprep.mubr.msk.f32.mxu1 %vm9152_vm0, %v10518_v35 }
 0x226   :  { %8012 = vmatprep.subr.bf16.mxu1 %v9151_v3 }
 0x229   :  { %8014 = vmatpush3.bf16.msra.mxu1 %v9223_v13 }
 0x22a   :  { %8015 = vmatprep.subr.bf16.mxu1 %v9151_v3 }
 0x22d   :  { %8017 = vmatpush3.bf16.msra.mxu1 %v9231_v18 }
 0x22e   :  { %8018 = vmatprep.subr.bf16.mxu1 %v9151_v3 }
 0x231   :  { %8020 = vmatpush3.bf16.msra.mxu1 %v9241_v28 }
 0x232   :  { %8021 = vmatprep.subr.bf16.mxu1 %v9151_v3 }
 0x235   :  { %8023 = vmatpush3.bf16.msra.mxu1 %v9251_v42 }
 0x236   :  { %8024 = vmatprep.subr.bf16.mxu1 %v9151_v3 }
 0x239   :  { %8026 = vmatpush3.bf16.msra.mxu1 %v9258_v46 }
 0x23a   :  { %8027 = vmatprep.subr.bf16.mxu1 %v9151_v3 }
 0x23d   :  { %8029 = vmatpush3.bf16.msra.mxu1 %v9260_v47 }
 0x23e   :  { %8030 = vmatprep.subr.bf16.mxu1 %v9151_v3 }
 0x241   :  { %8032 = vmatpush3.bf16.msra.mxu1 %v9283_v55 }
 0x242   :  { %8033 = vmatprep.subr.bf16.mxu1 %v9151_v3 }
 0x244   :  { %6461 = vmatmul.mubr.f32.vlgmr.msra.gmra.mrb[0].mxu1 %v811_v20 }
 0x245   :  { %8035 = vmatpush3.bf16.msra.mxu1 %v9327_v22  ;;  %6495 = vmatprep.mubr.msk.f32.mxu1 %vm9152_vm0, %v10518_v35 }
 0x246   :  { %8036 = vmatprep.subr.bf16.mxu1 %v9151_v3 }
 0x249   :  { %8038 = vmatpush3.bf16.msra.mxu1 %v9329_v24 }
 0x24a   :  { %8039 = vmatprep.subr.bf16.mxu1 %v9151_v3 }
 0x24d   :  { %8041 = vmatpush3.bf16.msra.mxu1 %v9332_v25 }
 0x24e   :  { %8042 = vmatprep.subr.bf16.mxu1 %v9151_v3 }
 0x251   :  { %8044 = vmatpush3.bf16.msra.mxu1 %v9334_v27 }
 0x252   :  { %8045 = vmatprep.subr.bf16.mxu1 %v9151_v3 }
 0x255   :  { %8047 = vmatpush3.bf16.msra.mxu1 %v9336_v29 }
 0x256   :  { %8048 = vmatprep.subr.bf16.mxu1 %v9151_v3 }
 0x259   :  { %8050 = vmatpush3.bf16.msra.mxu1 %v9338_v30 }
 0x25a   :  { %8051 = vmatprep.subr.bf16.mxu1 %v9151_v3 }
 0x25d   :  { %8053 = vmatpush3.bf16.msra.mxu1 %v9347_v34 }
 0x25e   :  { %8054 = vmatprep.subr.bf16.mxu1 %v9151_v3 }
 0x261   :  { %8056 = vmatpush3.bf16.msra.mxu1 %v9354_v40 }
 0x262   :  { %8057 = vmatprep.subr.bf16.mxu1 %v9151_v3 }
 0x264   :  { %6496 = vmatmul.mubr.f32.vlgmr.msra.gmra.mrb[0].mxu1 %v9542_v10 }
 0x265   :  { %8059 = vmatpush3.bf16.msra.mxu1 %v9218_v12  ;;  %6530 = vmatprep.mubr.msk.f32.mxu1 %vm9152_vm0, %v10518_v35 }
 0x266   :  { %8060 = vmatprep.subr.bf16.mxu1 %v9151_v3 }
 0x269   :  { %8062 = vmatpush3.bf16.msra.mxu1 %v9223_v13 }
 0x26a   :  { %8063 = vmatprep.subr.bf16.mxu1 %v9151_v3 }
 0x26d   :  { %8065 = vmatpush3.bf16.msra.mxu1 %v9231_v18 }
 0x26e   :  { %8066 = vmatprep.subr.bf16.mxu1 %v9151_v3 }
 0x271   :  { %8068 = vmatpush3.bf16.msra.mxu1 %v9241_v28 }
 0x272   :  { %8069 = vmatprep.subr.bf16.mxu1 %v9151_v3 }
 0x275   :  { %8071 = vmatpush3.bf16.msra.mxu1 %v9251_v42 }
 0x276   :  { %8072 = vmatprep.subr.bf16.mxu1 %v9151_v3 }
 0x279   :  { %8074 = vmatpush3.bf16.msra.mxu1 %v9258_v46 }
 0x27a   :  { %8075 = vmatprep.subr.bf16.mxu1 %v9151_v3 }
 0x27d   :  { %8077 = vmatpush3.bf16.msra.mxu1 %v9260_v47 }
 0x27e   :  { %8078 = vmatprep.subr.bf16.mxu1 %v9151_v3 }
 0x281   :  { %8080 = vmatpush3.bf16.msra.mxu1 %v9283_v55 }
 0x282   :  { %8225 = vmatprep.subr.bf16.mxu1 %v9151_v3 }
 0x284   :  { %6531 = vmatmul.mubr.f32.vlgmr.msra.gmra.mrb[0].mxu1 %v9542_v10 }
 0x285   :  { %8227 = vmatpush3.bf16.msra.mxu1 %v9218_v12  ;;  %6775 = vmatprep.mubr.msk.f32.mxu1 %vm9152_vm0, %v10518_v35 }
 0x286   :  { %8228 = vmatprep.subr.bf16.mxu1 %v9151_v3 }
 0x289   :  { %8230 = vmatpush3.bf16.msra.mxu1 %v9223_v13 }
 0x28a   :  { %8231 = vmatprep.subr.bf16.mxu1 %v9151_v3 }
 0x28d   :  { %8233 = vmatpush3.bf16.msra.mxu1 %v9231_v18 }
 0x28e   :  { %8234 = vmatprep.subr.bf16.mxu1 %v9151_v3 }
 0x291   :  { %8236 = vmatpush3.bf16.msra.mxu1 %v9241_v28 }
 0x292   :  { %8237 = vmatprep.subr.bf16.mxu1 %v9151_v3 }
 0x295   :  { %8239 = vmatpush3.bf16.msra.mxu1 %v9251_v42 }
 0x296   :  { %8240 = vmatprep.subr.bf16.mxu1 %v9151_v3 }
 0x299   :  { %8242 = vmatpush3.bf16.msra.mxu1 %v9258_v46 }
 0x29a   :  { %8243 = vmatprep.subr.bf16.mxu1 %v9151_v3 }
 0x29d   :  { %8245 = vmatpush3.bf16.msra.mxu1 %v9260_v47 }
 0x29e   :  { %8246 = vmatprep.subr.bf16.mxu1 %v9151_v3 }
 0x2a1   :  { %8248 = vmatpush3.bf16.msra.mxu1 %v9283_v55 }
 0x2a2   :  { %8249 = vmatprep.subr.bf16.mxu1 %v9151_v3 }
 0x357   :  { %v1365_v51 = vpop.f32.mrb[0].mxu1 }
 0x358   :  { %v8946_v8 = vadd.f32 %v1365_v51, %v727_v45  ;;  %v6532_v14 = vpop.f32.mrb[1].mxu1  ;;  %v2021_v45 = vadd.f32 %v9899_v44, %v2020_v7 }
 0x35a   :  { %9046 = vtanh.f32 %v8946_v8 }
 0x364   :  { %v9047_v63 = vpop.eup %9046 }
 0x365   :  { %v9661_v0 = vand.u32 4294901760, %v9047_v63  ;;  %v9663_v17 = vadd.f32 %v9047_v63, %v723_v62 }
 0x367   :  { %v1457_v2 = vsub.f32 %v9047_v63, %v9661_v0 }
 0x369   :  { %v1458_v19 = vand.u32 4294901760, %v1457_v2 }
 0x36b   :  { %v1459_v5 = vsub.f32 %v1457_v2, %v1458_v19 }
 0x36d   :  { %v1460_v21 = vand.u32 4294901760, %v1459_v5  ;;  %v2666_v5 = vstv %s5294_s18 }
 0x36f   :  { %6566 = vmatmul.mubr.f32.vlgmr.msra.gmra.mrb[2].mxu0 %v1460_v21  ;;  %v2667_v21 = vmul.f32 %v9896_v26, %v2666_v5 }
 0x370   :  { %8107 = vmatpush3.bf16.msra.mxu0 %v9363_v48  ;;  %6600 = vmatprep.mubr.msk.f32.mxu0 %vm9152_vm0, %v10518_v35 }
 0x371   :  { %8108 = vmatprep.subr.bf16.mxu0 %v9151_v3  ;;  %v2668_v54 = vadd.f32 %v9899_v44, %v2667_v21 }
 0x374   :  { %8110 = vmatpush3.bf16.msra.mxu0 %v9370_v39 }
 0x375   :  { %8111 = vmatprep.subr.bf16.mxu0 %v9151_v3 }
 0x378   :  { %8113 = vmatpush3.bf16.msra.mxu0 %v9376_v37 }
 0x379   :  { %8114 = vmatprep.subr.bf16.mxu0 %v9151_v3 }
 0x37c   :  { %8116 = vmatpush3.bf16.msra.mxu0 %v9381_v38 }
 0x37d   :  { %8117 = vmatprep.subr.bf16.mxu0 %v9151_v3 }
 0x380   :  { %8119 = vmatpush3.bf16.msra.mxu0 %v9389_v9 }
 0x381   :  { %8120 = vmatprep.subr.bf16.mxu0 %v9151_v3 }
 0x384   :  { %8122 = vmatpush3.bf16.msra.mxu0 %v9395_v16 }
 0x385   :  { %8123 = vmatprep.subr.bf16.mxu0 %v9151_v3 }
 0x388   :  { %8125 = vmatpush3.bf16.msra.mxu0 %v9400_v4 }
 0x389   :  { %8126 = vmatprep.subr.bf16.mxu0 %v9151_v3 }
 0x38c   :  { %8128 = vmatpush3.bf16.msra.mxu0 %v9404_v32 }
 0x38d   :  { %8129 = vmatprep.subr.bf16.mxu0 %v9151_v3 }
 0x38f   :  { %6601 = vmatmul.mubr.f32.vlgmr.msra.gmra.mrb[2].mxu0 %v9661_v0 }
 0x390   :  { %8131 = vmatpush3.bf16.msra.mxu0 %v9410_v33  ;;  %6635 = vmatprep.mubr.msk.f32.mxu0 %vm9152_vm0, %v10518_v35 }
 0x391   :  { %8132 = vmatprep.subr.bf16.mxu0 %v9151_v3 }
 0x394   :  { %8134 = vmatpush3.bf16.msra.mxu0 %v9417_v36 }
 0x395   :  { %8135 = vmatprep.subr.bf16.mxu0 %v9151_v3 }
 0x398   :  { %8137 = vmatpush3.bf16.msra.mxu0 %v9425_v41 }
 0x399   :  { %8138 = vmatprep.subr.bf16.mxu0 %v9151_v3 }
 0x39c   :  { %8140 = vmatpush3.bf16.msra.mxu0 %v9431_v43 }
 0x39d   :  { %8141 = vmatprep.subr.bf16.mxu0 %v9151_v3 }
 0x3a0   :  { %8143 = vmatpush3.bf16.msra.mxu0 %v9437_v49 }
 0x3a1   :  { %8144 = vmatprep.subr.bf16.mxu0 %v9151_v3 }
 0x3a4   :  { %8146 = vmatpush3.bf16.msra.mxu0 %v9443_v50 }
 0x3a5   :  { %8147 = vmatprep.subr.bf16.mxu0 %v9151_v3 }
 0x3a8   :  { %8149 = vmatpush3.bf16.msra.mxu0 %v9449_v52 }
 0x3a9   :  { %8150 = vmatprep.subr.bf16.mxu0 %v9151_v3 }
 0x3ac   :  { %8152 = vmatpush3.bf16.msra.mxu0 %v9455_v53 }
 0x3ad   :  { %8153 = vmatprep.subr.bf16.mxu0 %v9151_v3 }
 0x3af   :  { %6636 = vmatmul.mubr.f32.vlgmr.msra.gmra.mrb[2].mxu0 %v1457_v2 }
 0x3b0   :  { %8155 = vmatpush3.bf16.msra.mxu0 %v9218_v12  ;;  %6670 = vmatprep.mubr.msk.f32.mxu0 %vm9152_vm0, %v10518_v35 }
 0x3b1   :  { %8156 = vmatprep.subr.bf16.mxu0 %v9151_v3 }
 0x3b4   :  { %8158 = vmatpush3.bf16.msra.mxu0 %v9223_v13 }
 0x3b5   :  { %8159 = vmatprep.subr.bf16.mxu0 %v9151_v3 }
 0x3b8   :  { %8161 = vmatpush3.bf16.msra.mxu0 %v9231_v18 }
 0x3b9   :  { %8162 = vmatprep.subr.bf16.mxu0 %v9151_v3 }
 0x3bc   :  { %8164 = vmatpush3.bf16.msra.mxu0 %v9241_v28 }
 0x3bd   :  { %8165 = vmatprep.subr.bf16.mxu0 %v9151_v3 }
 0x3c0   :  { %8167 = vmatpush3.bf16.msra.mxu0 %v9251_v42 }
 0x3c1   :  { %8168 = vmatprep.subr.bf16.mxu0 %v9151_v3 }
 0x3c4   :  { %8170 = vmatpush3.bf16.msra.mxu0 %v9258_v46 }
 0x3c5   :  { %8171 = vmatprep.subr.bf16.mxu0 %v9151_v3 }
 0x3c8   :  { %8173 = vmatpush3.bf16.msra.mxu0 %v9260_v47 }
 0x3c9   :  { %8174 = vmatprep.subr.bf16.mxu0 %v9151_v3 }
 0x3cc   :  { %8176 = vmatpush3.bf16.msra.mxu0 %v9283_v55 }
 0x3cd   :  { %8177 = vmatprep.subr.bf16.mxu0 %v9151_v3 }
 0x3cf   :  { %6671 = vmatmul.mubr.f32.vlgmr.msra.gmra.mrb[2].mxu0 %v1458_v19 }
 0x3d0   :  { %8179 = vmatpush3.bf16.msra.mxu0 %v9327_v22  ;;  %6705 = vmatprep.mubr.msk.f32.mxu0 %vm9152_vm0, %v10518_v35 }
 0x3d1   :  { %8180 = vmatprep.subr.bf16.mxu0 %v9151_v3 }
 0x3d4   :  { %8182 = vmatpush3.bf16.msra.mxu0 %v9329_v24 }
 0x3d5   :  { %8183 = vmatprep.subr.bf16.mxu0 %v9151_v3 }
 0x3d8   :  { %8185 = vmatpush3.bf16.msra.mxu0 %v9332_v25 }
 0x3d9   :  { %8186 = vmatprep.subr.bf16.mxu0 %v9151_v3 }
 0x3dc   :  { %8188 = vmatpush3.bf16.msra.mxu0 %v9334_v27 }
 0x3dd   :  { %8189 = vmatprep.subr.bf16.mxu0 %v9151_v3 }
 0x3e0   :  { %8191 = vmatpush3.bf16.msra.mxu0 %v9336_v29 }
 0x3e1   :  { %8192 = vmatprep.subr.bf16.mxu0 %v9151_v3 }
 0x3e4   :  { %8194 = vmatpush3.bf16.msra.mxu0 %v9338_v30 }
 0x3e5   :  { %8195 = vmatprep.subr.bf16.mxu0 %v9151_v3 }
 0x3e8   :  { %8197 = vmatpush3.bf16.msra.mxu0 %v9347_v34 }
 0x3e9   :  { %8198 = vmatprep.subr.bf16.mxu0 %v9151_v3 }
 0x3ec   :  { %8200 = vmatpush3.bf16.msra.mxu0 %v9354_v40 }
 0x3ed   :  { %8201 = vmatprep.subr.bf16.mxu0 %v9151_v3 }
 0x3ef   :  { %6706 = vmatmul.mubr.f32.vlgmr.msra.gmra.mrb[2].mxu0 %v9661_v0 }
 0x3f0   :  { %8203 = vmatpush3.bf16.msra.mxu0 %v9218_v12  ;;  %6740 = vmatprep.mubr.msk.f32.mxu0 %vm9152_vm0, %v10518_v35 }
 0x3f1   :  { %8204 = vmatprep.subr.bf16.mxu0 %v9151_v3 }
 0x3f4   :  { %8206 = vmatpush3.bf16.msra.mxu0 %v9223_v13 }
 0x3f5   :  { %8207 = vmatprep.subr.bf16.mxu0 %v9151_v3 }
 0x3f8   :  { %8209 = vmatpush3.bf16.msra.mxu0 %v9231_v18 }
 0x3f9   :  { %8210 = vmatprep.subr.bf16.mxu0 %v9151_v3 }
 0x3fc   :  { %8212 = vmatpush3.bf16.msra.mxu0 %v9241_v28 }
 0x3fd   :  { %8213 = vmatprep.subr.bf16.mxu0 %v9151_v3 }
 0x400   :  { %8215 = vmatpush3.bf16.msra.mxu0 %v9251_v42 }
 0x401   :  { %8216 = vmatprep.subr.bf16.mxu0 %v9151_v3 }
 0x404   :  { %8218 = vmatpush3.bf16.msra.mxu0 %v9258_v46 }
 0x405   :  { %8219 = vmatprep.subr.bf16.mxu0 %v9151_v3 }
 0x408   :  { %8221 = vmatpush3.bf16.msra.mxu0 %v9260_v47 }
 0x409   :  { %8222 = vmatprep.subr.bf16.mxu0 %v9151_v3 }
 0x40c   :  { %8224 = vmatpush3.bf16.msra.mxu0 %v9283_v55 }
 0x40d   :  { %8369 = vmatprep.subr.bf16.mxu0 %v9151_v3 }
 0x40f   :  { %6741 = vmatmul.mubr.f32.vlgmr.msra.gmra.mrb[2].mxu0 %v9661_v0 }
 0x410   :  { %8371 = vmatpush3.bf16.msra.mxu0 %v9218_v12  ;;  %6985 = vmatprep.mubr.msk.f32.mxu0 %vm9152_vm0, %v10518_v35 }
 0x411   :  { %8372 = vmatprep.subr.bf16.mxu0 %v9151_v3 }
 0x414   :  { %8374 = vmatpush3.bf16.msra.mxu0 %v9223_v13 }
 0x415   :  { %8375 = vmatprep.subr.bf16.mxu0 %v9151_v3 }
 0x418   :  { %8377 = vmatpush3.bf16.msra.mxu0 %v9231_v18 }
 0x419   :  { %8378 = vmatprep.subr.bf16.mxu0 %v9151_v3 }
 0x41c   :  { %8380 = vmatpush3.bf16.msra.mxu0 %v9241_v28 }
 0x41d   :  { %8381 = vmatprep.subr.bf16.mxu0 %v9151_v3 }
 0x420   :  { %8383 = vmatpush3.bf16.msra.mxu0 %v9251_v42 }
 0x421   :  { %8384 = vmatprep.subr.bf16.mxu0 %v9151_v3 }
 0x424   :  { %8386 = vmatpush3.bf16.msra.mxu0 %v9258_v46 }
 0x425   :  { %8387 = vmatprep.subr.bf16.mxu0 %v9151_v3 }
 0x428   :  { %8389 = vmatpush3.bf16.msra.mxu0 %v9260_v47 }
 0x429   :  { %8390 = vmatprep.subr.bf16.mxu0 %v9151_v3 }
 0x42c   :  { %8392 = vmatpush3.bf16.msra.mxu0 %v9283_v55 }
 0x42d   :  { %8393 = vmatprep.subr.bf16.mxu0 %v9151_v3 }
 0x4e2   :  { %v2012_v58 = vpop.f32.mrb[2].mxu0 }
 0x4e3   :  { %v8947_v59 = vadd.f32 %v2012_v58, %v1374_v57  ;;  %v6742_v60 = vpop.f32.mrb[3].mxu0 }
 0x4e5   :  { %9048 = vtanh.f32 %v8947_v59 }
 0x4ef   :  { %v9049_v61 = vpop.eup %9048 }
 0x4f0   :  { %v9779_v1 = vand.u32 4294901760, %v9049_v61  ;;  %v9782_v10 = vadd.f32 %v9049_v61, %v9663_v17 }
 0x4f2   :  { %v2104_v11 = vsub.f32 %v9049_v61, %v9779_v1 }
 0x4f4   :  { %v2105_v20 = vand.u32 4294901760, %v2104_v11 }
 0x4f6   :  { %v2106_v31 = vsub.f32 %v2104_v11, %v2105_v20 }
 0x4f8   :  { %v2107_v6 = vand.u32 4294901760, %v2106_v31  ;;  %v3313_v31 = vstv %s5295_s19 }
 0x4fa   :  { %6776 = vmatmul.mubr.f32.vlgmr.msra.gmra.mrb[2].mxu1 %v2107_v6  ;;  %v3314_v6 = vmul.f32 %v9896_v26, %v3313_v31 }
 0x4fb   :  { %8251 = vmatpush3.bf16.msra.mxu1 %v9363_v48  ;;  %6810 = vmatprep.mubr.msk.f32.mxu1 %vm9152_vm0, %v10518_v35 }
 0x4fc   :  { %8252 = vmatprep.subr.bf16.mxu1 %v9151_v3  ;;  %v3315_v23 = vadd.f32 %v9899_v44, %v3314_v6 }
 0x4ff   :  { %8254 = vmatpush3.bf16.msra.mxu1 %v9370_v39 }
 0x500   :  { %8255 = vmatprep.subr.bf16.mxu1 %v9151_v3 }
 0x503   :  { %8257 = vmatpush3.bf16.msra.mxu1 %v9376_v37 }
 0x504   :  { %8258 = vmatprep.subr.bf16.mxu1 %v9151_v3 }
 0x507   :  { %8260 = vmatpush3.bf16.msra.mxu1 %v9381_v38 }
 0x508   :  { %8261 = vmatprep.subr.bf16.mxu1 %v9151_v3 }
 0x50b   :  { %8263 = vmatpush3.bf16.msra.mxu1 %v9389_v9 }
 0x50c   :  { %8264 = vmatprep.subr.bf16.mxu1 %v9151_v3 }
 0x50f   :  { %8266 = vmatpush3.bf16.msra.mxu1 %v9395_v16 }
 0x510   :  { %8267 = vmatprep.subr.bf16.mxu1 %v9151_v3 }
 0x513   :  { %8269 = vmatpush3.bf16.msra.mxu1 %v9400_v4 }
 0x514   :  { %8270 = vmatprep.subr.bf16.mxu1 %v9151_v3 }
 0x517   :  { %8272 = vmatpush3.bf16.msra.mxu1 %v9404_v32 }
 0x518   :  { %8273 = vmatprep.subr.bf16.mxu1 %v9151_v3 }
 0x51a   :  { %6811 = vmatmul.mubr.f32.vlgmr.msra.gmra.mrb[2].mxu1 %v9779_v1 }
 0x51b   :  { %8275 = vmatpush3.bf16.msra.mxu1 %v9410_v33  ;;  %6845 = vmatprep.mubr.msk.f32.mxu1 %vm9152_vm0, %v10518_v35 }
 0x51c   :  { %8276 = vmatprep.subr.bf16.mxu1 %v9151_v3 }
 0x51f   :  { %8278 = vmatpush3.bf16.msra.mxu1 %v9417_v36 }
 0x520   :  { %8279 = vmatprep.subr.bf16.mxu1 %v9151_v3 }
 0x523   :  { %8281 = vmatpush3.bf16.msra.mxu1 %v9425_v41 }
 0x524   :  { %8282 = vmatprep.subr.bf16.mxu1 %v9151_v3 }
 0x527   :  { %8284 = vmatpush3.bf16.msra.mxu1 %v9431_v43 }
 0x528   :  { %8285 = vmatprep.subr.bf16.mxu1 %v9151_v3 }
 0x52b   :  { %8287 = vmatpush3.bf16.msra.mxu1 %v9437_v49 }
 0x52c   :  { %8288 = vmatprep.subr.bf16.mxu1 %v9151_v3 }
 0x52f   :  { %8290 = vmatpush3.bf16.msra.mxu1 %v9443_v50 }
 0x530   :  { %8291 = vmatprep.subr.bf16.mxu1 %v9151_v3 }
 0x533   :  { %8293 = vmatpush3.bf16.msra.mxu1 %v9449_v52 }
 0x534   :  { %8294 = vmatprep.subr.bf16.mxu1 %v9151_v3 }
 0x537   :  { %8296 = vmatpush3.bf16.msra.mxu1 %v9455_v53 }
 0x538   :  { %8297 = vmatprep.subr.bf16.mxu1 %v9151_v3 }
 0x53a   :  { %6846 = vmatmul.mubr.f32.vlgmr.msra.gmra.mrb[2].mxu1 %v2104_v11 }
 0x53b   :  { %8299 = vmatpush3.bf16.msra.mxu1 %v9218_v12  ;;  %6880 = vmatprep.mubr.msk.f32.mxu1 %vm9152_vm0, %v10518_v35 }
 0x53c   :  { %8300 = vmatprep.subr.bf16.mxu1 %v9151_v3 }
 0x53f   :  { %8302 = vmatpush3.bf16.msra.mxu1 %v9223_v13 }
 0x540   :  { %8303 = vmatprep.subr.bf16.mxu1 %v9151_v3 }
 0x543   :  { %8305 = vmatpush3.bf16.msra.mxu1 %v9231_v18 }
 0x544   :  { %8306 = vmatprep.subr.bf16.mxu1 %v9151_v3 }
 0x547   :  { %8308 = vmatpush3.bf16.msra.mxu1 %v9241_v28 }
 0x548   :  { %8309 = vmatprep.subr.bf16.mxu1 %v9151_v3 }
 0x54b   :  { %8311 = vmatpush3.bf16.msra.mxu1 %v9251_v42 }
 0x54c   :  { %8312 = vmatprep.subr.bf16.mxu1 %v9151_v3 }
 0x54f   :  { %8314 = vmatpush3.bf16.msra.mxu1 %v9258_v46 }
 0x550   :  { %8315 = vmatprep.subr.bf16.mxu1 %v9151_v3 }
 0x553   :  { %8317 = vmatpush3.bf16.msra.mxu1 %v9260_v47 }
 0x554   :  { %8318 = vmatprep.subr.bf16.mxu1 %v9151_v3 }
 0x557   :  { %8320 = vmatpush3.bf16.msra.mxu1 %v9283_v55 }
 0x558   :  { %8321 = vmatprep.subr.bf16.mxu1 %v9151_v3 }
 0x55a   :  { %6881 = vmatmul.mubr.f32.vlgmr.msra.gmra.mrb[2].mxu1 %v2105_v20 }
 0x55b   :  { %8323 = vmatpush3.bf16.msra.mxu1 %v9327_v22  ;;  %6915 = vmatprep.mubr.msk.f32.mxu1 %vm9152_vm0, %v10518_v35 }
 0x55c   :  { %8324 = vmatprep.subr.bf16.mxu1 %v9151_v3 }
 0x55f   :  { %8326 = vmatpush3.bf16.msra.mxu1 %v9329_v24 }
 0x560   :  { %8327 = vmatprep.subr.bf16.mxu1 %v9151_v3 }
 0x563   :  { %8329 = vmatpush3.bf16.msra.mxu1 %v9332_v25 }
 0x564   :  { %8330 = vmatprep.subr.bf16.mxu1 %v9151_v3 }
 0x567   :  { %8332 = vmatpush3.bf16.msra.mxu1 %v9334_v27 }
 0x568   :  { %8333 = vmatprep.subr.bf16.mxu1 %v9151_v3 }
 0x56b   :  { %8335 = vmatpush3.bf16.msra.mxu1 %v9336_v29 }
 0x56c   :  { %8336 = vmatprep.subr.bf16.mxu1 %v9151_v3 }
 0x56f   :  { %8338 = vmatpush3.bf16.msra.mxu1 %v9338_v30 }
 0x570   :  { %8339 = vmatprep.subr.bf16.mxu1 %v9151_v3 }
 0x573   :  { %8341 = vmatpush3.bf16.msra.mxu1 %v9347_v34 }
 0x574   :  { %8342 = vmatprep.subr.bf16.mxu1 %v9151_v3 }
 0x577   :  { %8344 = vmatpush3.bf16.msra.mxu1 %v9354_v40 }
 0x578   :  { %8345 = vmatprep.subr.bf16.mxu1 %v9151_v3 }
 0x57a   :  { %6916 = vmatmul.mubr.f32.vlgmr.msra.gmra.mrb[2].mxu1 %v9779_v1 }
 0x57b   :  { %8347 = vmatpush3.bf16.msra.mxu1 %v9218_v12  ;;  %6950 = vmatprep.mubr.msk.f32.mxu1 %vm9152_vm0, %v10518_v35 }
 0x57c   :  { %8348 = vmatprep.subr.bf16.mxu1 %v9151_v3 }
 0x57f   :  { %8350 = vmatpush3.bf16.msra.mxu1 %v9223_v13 }
 0x580   :  { %8351 = vmatprep.subr.bf16.mxu1 %v9151_v3 }
 0x583   :  { %8353 = vmatpush3.bf16.msra.mxu1 %v9231_v18 }
 0x584   :  { %8354 = vmatprep.subr.bf16.mxu1 %v9151_v3 }
 0x587   :  { %8356 = vmatpush3.bf16.msra.mxu1 %v9241_v28 }
 0x588   :  { %8357 = vmatprep.subr.bf16.mxu1 %v9151_v3 }
 0x58b   :  { %8359 = vmatpush3.bf16.msra.mxu1 %v9251_v42 }
 0x58c   :  { %8360 = vmatprep.subr.bf16.mxu1 %v9151_v3 }
 0x58f   :  { %8362 = vmatpush3.bf16.msra.mxu1 %v9258_v46 }
 0x590   :  { %8363 = vmatprep.subr.bf16.mxu1 %v9151_v3 }
 0x593   :  { %8365 = vmatpush3.bf16.msra.mxu1 %v9260_v47 }
 0x594   :  { %8366 = vmatprep.subr.bf16.mxu1 %v9151_v3 }
 0x597   :  { %8368 = vmatpush3.bf16.msra.mxu1 %v9283_v55 }
 0x598   :  { %8513 = vmatprep.subr.bf16.mxu1 %v9151_v3 }
 0x59a   :  { %6951 = vmatmul.mubr.f32.vlgmr.msra.gmra.mrb[2].mxu1 %v9779_v1 }
 0x59b   :  { %8515 = vmatpush3.bf16.msra.mxu1 %v9218_v12  ;;  %7195 = vmatprep.mubr.msk.f32.mxu1 %vm9152_vm0, %v10518_v35 }
 0x59c   :  { %8516 = vmatprep.subr.bf16.mxu1 %v9151_v3 }
 0x59f   :  { %8518 = vmatpush3.bf16.msra.mxu1 %v9223_v13 }
 0x5a0   :  { %8519 = vmatprep.subr.bf16.mxu1 %v9151_v3 }
 0x5a3   :  { %8521 = vmatpush3.bf16.msra.mxu1 %v9231_v18 }
 0x5a4   :  { %8522 = vmatprep.subr.bf16.mxu1 %v9151_v3 }
 0x5a7   :  { %8524 = vmatpush3.bf16.msra.mxu1 %v9241_v28 }
 0x5a8   :  { %8525 = vmatprep.subr.bf16.mxu1 %v9151_v3 }
 0x5ab   :  { %8527 = vmatpush3.bf16.msra.mxu1 %v9251_v42 }
 0x5ac   :  { %8528 = vmatprep.subr.bf16.mxu1 %v9151_v3 }
 0x5af   :  { %8530 = vmatpush3.bf16.msra.mxu1 %v9258_v46 }
 0x5b0   :  { %8531 = vmatprep.subr.bf16.mxu1 %v9151_v3 }
 0x5b3   :  { %8533 = vmatpush3.bf16.msra.mxu1 %v9260_v47 }
 0x5b4   :  { %8534 = vmatprep.subr.bf16.mxu1 %v9151_v3 }
 0x5b7   :  { %8536 = vmatpush3.bf16.msra.mxu1 %v9283_v55 }
 0x5b8   :  { %8537 = vmatprep.subr.bf16.mxu1 %v9151_v3 }
 0x66d   :  { %v2659_v51 = vpop.f32.mrb[2].mxu1 }
 0x66e   :  { %v8948_v8 = vadd.f32 %v2659_v51, %v2021_v45  ;;  %v6952_v14 = vpop.f32.mrb[3].mxu1 }
 0x670   :  { %9050 = vtanh.f32 %v8948_v8 }
 0x67a   :  { %v9051_v15 = vpop.eup %9050 }
 0x67b   :  { %v9902_v62 = vand.u32 4294901760, %v9051_v15  ;;  %v9905_v63 = vadd.f32 %v9051_v15, %v9782_v10 }
 0x67d   :  { %v2751_v0 = vsub.f32 %v9051_v15, %v9902_v62 }
 0x67f   :  { %v2752_v17 = vand.u32 4294901760, %v2751_v0 }
 0x681   :  { %v2753_v2 = vsub.f32 %v2751_v0, %v2752_v17 }
 0x683   :  { %v2754_v19 = vand.u32 4294901760, %v2753_v2 }
 0x685   :  { %6986 = vmatmul.mubr.f32.vlgmr.msra.gmra.mrb[4].mxu0 %v2754_v19 }
 0x686   :  { %8395 = vmatpush3.bf16.msra.mxu0 %v9363_v48  ;;  %7020 = vmatprep.mubr.msk.f32.mxu0 %vm9152_vm0, %v10518_v35 }
 0x687   :  { %8396 = vmatprep.subr.bf16.mxu0 %v9151_v3 }
 0x68a   :  { %8398 = vmatpush3.bf16.msra.mxu0 %v9370_v39 }
 0x68b   :  { %8399 = vmatprep.subr.bf16.mxu0 %v9151_v3 }
 0x68e   :  { %8401 = vmatpush3.bf16.msra.mxu0 %v9376_v37 }
 0x68f   :  { %8402 = vmatprep.subr.bf16.mxu0 %v9151_v3 }
 0x692   :  { %8404 = vmatpush3.bf16.msra.mxu0 %v9381_v38 }
 0x693   :  { %8405 = vmatprep.subr.bf16.mxu0 %v9151_v3 }
 0x696   :  { %8407 = vmatpush3.bf16.msra.mxu0 %v9389_v9 }
 0x697   :  { %8408 = vmatprep.subr.bf16.mxu0 %v9151_v3 }
 0x69a   :  { %8410 = vmatpush3.bf16.msra.mxu0 %v9395_v16 }
 0x69b   :  { %8411 = vmatprep.subr.bf16.mxu0 %v9151_v3 }
 0x69e   :  { %8413 = vmatpush3.bf16.msra.mxu0 %v9400_v4 }
 0x69f   :  { %8414 = vmatprep.subr.bf16.mxu0 %v9151_v3 }
 0x6a2   :  { %8416 = vmatpush3.bf16.msra.mxu0 %v9404_v32 }
 0x6a3   :  { %8417 = vmatprep.subr.bf16.mxu0 %v9151_v3 }
 0x6a5   :  { %7021 = vmatmul.mubr.f32.vlgmr.msra.gmra.mrb[4].mxu0 %v9902_v62 }
 0x6a6   :  { %8419 = vmatpush3.bf16.msra.mxu0 %v9410_v33  ;;  %7055 = vmatprep.mubr.msk.f32.mxu0 %vm9152_vm0, %v10518_v35 }
 0x6a7   :  { %8420 = vmatprep.subr.bf16.mxu0 %v9151_v3 }
 0x6aa   :  { %8422 = vmatpush3.bf16.msra.mxu0 %v9417_v36 }
 0x6ab   :  { %8423 = vmatprep.subr.bf16.mxu0 %v9151_v3 }
 0x6ae   :  { %8425 = vmatpush3.bf16.msra.mxu0 %v9425_v41 }
 0x6af   :  { %8426 = vmatprep.subr.bf16.mxu0 %v9151_v3 }
 0x6b2   :  { %8428 = vmatpush3.bf16.msra.mxu0 %v9431_v43 }
 0x6b3   :  { %8429 = vmatprep.subr.bf16.mxu0 %v9151_v3 }
 0x6b6   :  { %8431 = vmatpush3.bf16.msra.mxu0 %v9437_v49 }
 0x6b7   :  { %8432 = vmatprep.subr.bf16.mxu0 %v9151_v3 }
 0x6ba   :  { %8434 = vmatpush3.bf16.msra.mxu0 %v9443_v50 }
 0x6bb   :  { %8435 = vmatprep.subr.bf16.mxu0 %v9151_v3 }
 0x6be   :  { %8437 = vmatpush3.bf16.msra.mxu0 %v9449_v52 }
 0x6bf   :  { %8438 = vmatprep.subr.bf16.mxu0 %v9151_v3 }
 0x6c2   :  { %8440 = vmatpush3.bf16.msra.mxu0 %v9455_v53 }
 0x6c3   :  { %8441 = vmatprep.subr.bf16.mxu0 %v9151_v3 }
 0x6c5   :  { %7056 = vmatmul.mubr.f32.vlgmr.msra.gmra.mrb[4].mxu0 %v2751_v0 }
 0x6c6   :  { %8443 = vmatpush3.bf16.msra.mxu0 %v9218_v12  ;;  %7090 = vmatprep.mubr.msk.f32.mxu0 %vm9152_vm0, %v10518_v35 }
 0x6c7   :  { %8444 = vmatprep.subr.bf16.mxu0 %v9151_v3 }
 0x6ca   :  { %8446 = vmatpush3.bf16.msra.mxu0 %v9223_v13 }
 0x6cb   :  { %8447 = vmatprep.subr.bf16.mxu0 %v9151_v3 }
 0x6ce   :  { %8449 = vmatpush3.bf16.msra.mxu0 %v9231_v18 }
 0x6cf   :  { %8450 = vmatprep.subr.bf16.mxu0 %v9151_v3 }
 0x6d2   :  { %8452 = vmatpush3.bf16.msra.mxu0 %v9241_v28 }
 0x6d3   :  { %8453 = vmatprep.subr.bf16.mxu0 %v9151_v3 }
 0x6d6   :  { %8455 = vmatpush3.bf16.msra.mxu0 %v9251_v42 }
 0x6d7   :  { %8456 = vmatprep.subr.bf16.mxu0 %v9151_v3 }
 0x6da   :  { %8458 = vmatpush3.bf16.msra.mxu0 %v9258_v46 }
 0x6db   :  { %8459 = vmatprep.subr.bf16.mxu0 %v9151_v3 }
 0x6de   :  { %8461 = vmatpush3.bf16.msra.mxu0 %v9260_v47 }
 0x6df   :  { %8462 = vmatprep.subr.bf16.mxu0 %v9151_v3 }
 0x6e2   :  { %8464 = vmatpush3.bf16.msra.mxu0 %v9283_v55 }
 0x6e3   :  { %8465 = vmatprep.subr.bf16.mxu0 %v9151_v3 }
 0x6e5   :  { %7091 = vmatmul.mubr.f32.vlgmr.msra.gmra.mrb[4].mxu0 %v2752_v17 }
 0x6e6   :  { %8467 = vmatpush3.bf16.msra.mxu0 %v9327_v22  ;;  %7125 = vmatprep.mubr.msk.f32.mxu0 %vm9152_vm0, %v10518_v35 }
 0x6e7   :  { %8468 = vmatprep.subr.bf16.mxu0 %v9151_v3 }
 0x6ea   :  { %8470 = vmatpush3.bf16.msra.mxu0 %v9329_v24 }
 0x6eb   :  { %8471 = vmatprep.subr.bf16.mxu0 %v9151_v3 }
 0x6ee   :  { %8473 = vmatpush3.bf16.msra.mxu0 %v9332_v25 }
 0x6ef   :  { %8474 = vmatprep.subr.bf16.mxu0 %v9151_v3 }
 0x6f2   :  { %8476 = vmatpush3.bf16.msra.mxu0 %v9334_v27 }
 0x6f3   :  { %8477 = vmatprep.subr.bf16.mxu0 %v9151_v3 }
 0x6f6   :  { %8479 = vmatpush3.bf16.msra.mxu0 %v9336_v29 }
 0x6f7   :  { %8480 = vmatprep.subr.bf16.mxu0 %v9151_v3 }
 0x6fa   :  { %8482 = vmatpush3.bf16.msra.mxu0 %v9338_v30 }
 0x6fb   :  { %8483 = vmatprep.subr.bf16.mxu0 %v9151_v3 }
 0x6fe   :  { %8485 = vmatpush3.bf16.msra.mxu0 %v9347_v34 }
 0x6ff   :  { %8486 = vmatprep.subr.bf16.mxu0 %v9151_v3 }
 0x702   :  { %8488 = vmatpush3.bf16.msra.mxu0 %v9354_v40 }
 0x703   :  { %8489 = vmatprep.subr.bf16.mxu0 %v9151_v3 }
 0x705   :  { %7126 = vmatmul.mubr.f32.vlgmr.msra.gmra.mrb[4].mxu0 %v9902_v62 }
 0x706   :  { %8491 = vmatpush3.bf16.msra.mxu0 %v9218_v12  ;;  %7160 = vmatprep.mubr.msk.f32.mxu0 %vm9152_vm0, %v10518_v35 }
 0x707   :  { %8492 = vmatprep.subr.bf16.mxu0 %v9151_v3 }
 0x70a   :  { %8494 = vmatpush3.bf16.msra.mxu0 %v9223_v13 }
 0x70b   :  { %8495 = vmatprep.subr.bf16.mxu0 %v9151_v3 }
 0x70e   :  { %8497 = vmatpush3.bf16.msra.mxu0 %v9231_v18 }
 0x70f   :  { %8498 = vmatprep.subr.bf16.mxu0 %v9151_v3 }
 0x712   :  { %8500 = vmatpush3.bf16.msra.mxu0 %v9241_v28 }
 0x713   :  { %8501 = vmatprep.subr.bf16.mxu0 %v9151_v3 }
 0x716   :  { %8503 = vmatpush3.bf16.msra.mxu0 %v9251_v42 }
 0x717   :  { %8504 = vmatprep.subr.bf16.mxu0 %v9151_v3 }
 0x71a   :  { %8506 = vmatpush3.bf16.msra.mxu0 %v9258_v46 }
 0x71b   :  { %8507 = vmatprep.subr.bf16.mxu0 %v9151_v3 }
 0x71e   :  { %8509 = vmatpush3.bf16.msra.mxu0 %v9260_v47 }
 0x71f   :  { %8510 = vmatprep.subr.bf16.mxu0 %v9151_v3 }
 0x722   :  { %8512 = vmatpush3.bf16.msra.mxu0 %v9283_v55 }
 0x723   :  { %8657 = vmatprep.subr.bf16.mxu0 %v9151_v3 }
 0x725   :  { %7161 = vmatmul.mubr.f32.vlgmr.msra.gmra.mrb[4].mxu0 %v9902_v62 }
 0x726   :  { %8659 = vmatpush3.bf16.msra.mxu0 %v9218_v12  ;;  %7405 = vmatprep.mubr.msk.f32.mxu0 %vm9152_vm0, %v10518_v35 }
 0x727   :  { %8660 = vmatprep.subr.bf16.mxu0 %v9151_v3 }
 0x72a   :  { %8662 = vmatpush3.bf16.msra.mxu0 %v9223_v13 }
 0x72b   :  { %8663 = vmatprep.subr.bf16.mxu0 %v9151_v3 }
 0x72e   :  { %8665 = vmatpush3.bf16.msra.mxu0 %v9231_v18 }
 0x72f   :  { %8666 = vmatprep.subr.bf16.mxu0 %v9151_v3 }
 0x732   :  { %8668 = vmatpush3.bf16.msra.mxu0 %v9241_v28 }
 0x733   :  { %8669 = vmatprep.subr.bf16.mxu0 %v9151_v3 }
 0x736   :  { %8671 = vmatpush3.bf16.msra.mxu0 %v9251_v42 }
 0x737   :  { %8672 = vmatprep.subr.bf16.mxu0 %v9151_v3 }
 0x73a   :  { %8674 = vmatpush3.bf16.msra.mxu0 %v9258_v46 }
 0x73b   :  { %8675 = vmatprep.subr.bf16.mxu0 %v9151_v3 }
 0x73e   :  { %8677 = vmatpush3.bf16.msra.mxu0 %v9260_v47 }
 0x73f   :  { %8678 = vmatprep.subr.bf16.mxu0 %v9151_v3 }
 0x742   :  { %8680 = vmatpush3.bf16.msra.mxu0 %v9283_v55 }
 0x743   :  { %8681 = vmatprep.subr.bf16.mxu0 %v9151_v3 }
 0x7f8   :  { %v3306_v56 = vpop.f32.mrb[4].mxu0 }
 0x7f9   :  { %v8949_v57 = vadd.f32 %v3306_v56, %v2668_v54  ;;  %v7162_v58 = vpop.f32.mrb[5].mxu0 }
 0x7fb   :  { %9052 = vtanh.f32 %v8949_v57 }
 0x805   :  { %v9053_v59 = vpop.eup %9052 }
 0x806   :  { %v10021_v60 = vand.u32 4294901760, %v9053_v59  ;;  %v10024_v61 = vadd.f32 %v9053_v59, %v9905_v63 }
 0x808   :  { %v3398_v1 = vsub.f32 %v9053_v59, %v10021_v60 }
 0x80a   :  { %v3399_v10 = vand.u32 4294901760, %v3398_v1 }
 0x80c   :  { %v3400_v11 = vsub.f32 %v3398_v1, %v3399_v10 }
 0x80e   :  { %v3401_v20 = vand.u32 4294901760, %v3400_v11 }
 0x810   :  { %7196 = vmatmul.mubr.f32.vlgmr.msra.gmra.mrb[4].mxu1 %v3401_v20 }
 0x811   :  { %8539 = vmatpush3.bf16.msra.mxu1 %v9363_v48  ;;  %7230 = vmatprep.mubr.msk.f32.mxu1 %vm9152_vm0, %v10518_v35 }
 0x812   :  { %8540 = vmatprep.subr.bf16.mxu1 %v9151_v3 }
 0x815   :  { %8542 = vmatpush3.bf16.msra.mxu1 %v9370_v39 }
 0x816   :  { %8543 = vmatprep.subr.bf16.mxu1 %v9151_v3 }
 0x819   :  { %8545 = vmatpush3.bf16.msra.mxu1 %v9376_v37 }
 0x81a   :  { %8546 = vmatprep.subr.bf16.mxu1 %v9151_v3 }
 0x81d   :  { %8548 = vmatpush3.bf16.msra.mxu1 %v9381_v38 }
 0x81e   :  { %8549 = vmatprep.subr.bf16.mxu1 %v9151_v3 }
 0x821   :  { %8551 = vmatpush3.bf16.msra.mxu1 %v9389_v9 }
 0x822   :  { %8552 = vmatprep.subr.bf16.mxu1 %v9151_v3 }
 0x825   :  { %8554 = vmatpush3.bf16.msra.mxu1 %v9395_v16 }
 0x826   :  { %8555 = vmatprep.subr.bf16.mxu1 %v9151_v3 }
 0x829   :  { %8557 = vmatpush3.bf16.msra.mxu1 %v9400_v4 }
 0x82a   :  { %8558 = vmatprep.subr.bf16.mxu1 %v9151_v3 }
 0x82d   :  { %8560 = vmatpush3.bf16.msra.mxu1 %v9404_v32 }
 0x82e   :  { %8561 = vmatprep.subr.bf16.mxu1 %v9151_v3 }
 0x830   :  { %7231 = vmatmul.mubr.f32.vlgmr.msra.gmra.mrb[4].mxu1 %v10021_v60 }
 0x831   :  { %8563 = vmatpush3.bf16.msra.mxu1 %v9410_v33  ;;  %7265 = vmatprep.mubr.msk.f32.mxu1 %vm9152_vm0, %v10518_v35 }
 0x832   :  { %8564 = vmatprep.subr.bf16.mxu1 %v9151_v3 }
 0x835   :  { %8566 = vmatpush3.bf16.msra.mxu1 %v9417_v36 }
 0x836   :  { %8567 = vmatprep.subr.bf16.mxu1 %v9151_v3 }
 0x839   :  { %8569 = vmatpush3.bf16.msra.mxu1 %v9425_v41 }
 0x83a   :  { %8570 = vmatprep.subr.bf16.mxu1 %v9151_v3 }
 0x83d   :  { %8572 = vmatpush3.bf16.msra.mxu1 %v9431_v43 }
 0x83e   :  { %8573 = vmatprep.subr.bf16.mxu1 %v9151_v3 }
 0x841   :  { %8575 = vmatpush3.bf16.msra.mxu1 %v9437_v49 }
 0x842   :  { %8576 = vmatprep.subr.bf16.mxu1 %v9151_v3 }
 0x845   :  { %8578 = vmatpush3.bf16.msra.mxu1 %v9443_v50 }
 0x846   :  { %8579 = vmatprep.subr.bf16.mxu1 %v9151_v3 }
 0x849   :  { %8581 = vmatpush3.bf16.msra.mxu1 %v9449_v52 }
 0x84a   :  { %8582 = vmatprep.subr.bf16.mxu1 %v9151_v3 }
 0x84d   :  { %8584 = vmatpush3.bf16.msra.mxu1 %v9455_v53 }
 0x84e   :  { %8585 = vmatprep.subr.bf16.mxu1 %v9151_v3 }
 0x850   :  { %7266 = vmatmul.mubr.f32.vlgmr.msra.gmra.mrb[4].mxu1 %v3398_v1  ;;  %v4621_v1 = vld [vmem:[#allocation6 + $0xf8] sm:$0xff] }
 0x851   :  { %8587 = vmatpush3.bf16.msra.mxu1 %v9218_v12  ;;  %7300 = vmatprep.mubr.msk.f32.mxu1 %vm9152_vm0, %v10518_v35 }
 0x852   :  { %8588 = vmatprep.subr.bf16.mxu1 %v9151_v3 }
 0x855   :  { %8590 = vmatpush3.bf16.msra.mxu1 %v9223_v13 }
 0x856   :  { %8591 = vmatprep.subr.bf16.mxu1 %v9151_v3 }
 0x859   :  { %8593 = vmatpush3.bf16.msra.mxu1 %v9231_v18 }
 0x85a   :  { %8594 = vmatprep.subr.bf16.mxu1 %v9151_v3 }
 0x85d   :  { %8596 = vmatpush3.bf16.msra.mxu1 %v9241_v28 }
 0x85e   :  { %8597 = vmatprep.subr.bf16.mxu1 %v9151_v3 }
 0x861   :  { %8599 = vmatpush3.bf16.msra.mxu1 %v9251_v42 }
 0x862   :  { %8600 = vmatprep.subr.bf16.mxu1 %v9151_v3 }
 0x865   :  { %8602 = vmatpush3.bf16.msra.mxu1 %v9258_v46 }
 0x866   :  { %8603 = vmatprep.subr.bf16.mxu1 %v9151_v3 }
 0x869   :  { %8605 = vmatpush3.bf16.msra.mxu1 %v9260_v47 }
 0x86a   :  { %8606 = vmatprep.subr.bf16.mxu1 %v9151_v3 }
 0x86d   :  { %8608 = vmatpush3.bf16.msra.mxu1 %v9283_v55 }
 0x86e   :  { %8609 = vmatprep.subr.bf16.mxu1 %v9151_v3 }
 0x870   :  { %7301 = vmatmul.mubr.f32.vlgmr.msra.gmra.mrb[4].mxu1 %v3399_v10 }
 0x871   :  { %8611 = vmatpush3.bf16.msra.mxu1 %v9327_v22  ;;  %7335 = vmatprep.mubr.msk.f32.mxu1 %vm9152_vm0, %v10518_v35 }
 0x872   :  { %8612 = vmatprep.subr.bf16.mxu1 %v9151_v3 }
 0x875   :  { %8614 = vmatpush3.bf16.msra.mxu1 %v9329_v24 }
 0x876   :  { %8615 = vmatprep.subr.bf16.mxu1 %v9151_v3 }
 0x879   :  { %8617 = vmatpush3.bf16.msra.mxu1 %v9332_v25 }
 0x87a   :  { %8618 = vmatprep.subr.bf16.mxu1 %v9151_v3 }
 0x87d   :  { %8620 = vmatpush3.bf16.msra.mxu1 %v9334_v27 }
 0x87e   :  { %8621 = vmatprep.subr.bf16.mxu1 %v9151_v3 }
 0x881   :  { %8623 = vmatpush3.bf16.msra.mxu1 %v9336_v29 }
 0x882   :  { %8624 = vmatprep.subr.bf16.mxu1 %v9151_v3 }
 0x885   :  { %8626 = vmatpush3.bf16.msra.mxu1 %v9338_v30 }
 0x886   :  { %8627 = vmatprep.subr.bf16.mxu1 %v9151_v3 }
 0x889   :  { %8629 = vmatpush3.bf16.msra.mxu1 %v9347_v34 }
 0x88a   :  { %8630 = vmatprep.subr.bf16.mxu1 %v9151_v3 }
 0x88d   :  { %8632 = vmatpush3.bf16.msra.mxu1 %v9354_v40 }
 0x88e   :  { %8633 = vmatprep.subr.bf16.mxu1 %v9151_v3 }
 0x890   :  { %7336 = vmatmul.mubr.f32.vlgmr.msra.gmra.mrb[4].mxu1 %v10021_v60 }
 0x891   :  { %8635 = vmatpush3.bf16.msra.mxu1 %v9218_v12  ;;  %7370 = vmatprep.mubr.msk.f32.mxu1 %vm9152_vm0, %v10518_v35 }
 0x892   :  { %8636 = vmatprep.subr.bf16.mxu1 %v9151_v3 }
 0x895   :  { %8638 = vmatpush3.bf16.msra.mxu1 %v9223_v13 }
 0x896   :  { %8639 = vmatprep.subr.bf16.mxu1 %v9151_v3 }
 0x899   :  { %8641 = vmatpush3.bf16.msra.mxu1 %v9231_v18 }
 0x89a   :  { %8642 = vmatprep.subr.bf16.mxu1 %v9151_v3 }
 0x89d   :  { %8644 = vmatpush3.bf16.msra.mxu1 %v9241_v28 }
 0x89e   :  { %8645 = vmatprep.subr.bf16.mxu1 %v9151_v3 }
 0x8a1   :  { %8647 = vmatpush3.bf16.msra.mxu1 %v9251_v42 }
 0x8a2   :  { %8648 = vmatprep.subr.bf16.mxu1 %v9151_v3 }
 0x8a5   :  { %8650 = vmatpush3.bf16.msra.mxu1 %v9258_v46 }
 0x8a6   :  { %8651 = vmatprep.subr.bf16.mxu1 %v9151_v3 }
 0x8a9   :  { %8653 = vmatpush3.bf16.msra.mxu1 %v9260_v47 }
 0x8aa   :  { %8654 = vmatprep.subr.bf16.mxu1 %v9151_v3 }
 0x8ad   :  { %8656 = vmatpush3.bf16.msra.mxu1 %v9283_v55 }
 0x8ae   :  { %8801 = vmatprep.subr.bf16.mxu1 %v9151_v3 }
 0x8b0   :  { %7371 = vmatmul.mubr.f32.vlgmr.msra.gmra.mrb[4].mxu1 %v10021_v60 }
 0x8b1   :  { %7615 = vmatprep.mubr.msk.f32.mxu1 %vm9152_vm0, %v10518_v35 }
 0x983   :  { %v3953_v7 = vpop.f32.mrb[4].mxu1 }
 0x984   :  { %v8950_v45 = vadd.f32 %v3953_v7, %v3315_v23  ;;  %v7372_v51 = vpop.f32.mrb[5].mxu1 }
 0x985   :  { %v4669_v51 = vand.u32 4294901760, %v4621_v1 }
 0x986   :  { %9054 = vtanh.f32 %v8950_v45 }
 0x990   :  { %v9055_v8 = vpop.eup %9054 }
 0x991   :  { %v10124_v14 = vand.u32 4294901760, %v9055_v8  ;;  %v10127_v15 = vadd.f32 %v9055_v8, %v10024_v61  ;;  %v4620_v61 = vld [vmem:[#allocation6 + $0xf0] sm:$0xff] }
 0x992   :  { %v4666_v45 = vand.u32 4294901760, %v4620_v61 }
 0x993   :  { %v10130_v62 = vsub.f32 %v9055_v8, %v10124_v14 }
 0x995   :  { %v4046_v63 = vand.u32 4294901760, %v10130_v62 }
 0x997   :  { %v4047_v0 = vsub.f32 %v10130_v62, %v4046_v63 }
 0x999   :  { %v4048_v17 = vand.u32 4294901760, %v4047_v0  ;;  %v10293_v0 = vsub.f32 %v4621_v1, %v4669_v51 }
 0x99b   :  { %7406 = vmatmul.mubr.f32.vlgmr.msra.gmra.mrb[6].mxu0 %v4048_v17 }
 0x99c   :  { %8683 = vmatpush3.bf16.msra.mxu0 %v9363_v48  ;;  %7440 = vmatprep.mubr.msk.f32.mxu0 %vm9152_vm0, %v10518_v35  ;;  %v4607_v48 = vld [vmem:[#allocation6 + $0x88] sm:$0xff] }
 0x99d   :  { %8684 = vmatprep.subr.bf16.mxu0 %v9151_v3 }
 0x9a0   :  { %8686 = vmatpush3.bf16.msra.mxu0 %v9370_v39  ;;  %v4606_v39 = vld [vmem:[#allocation6 + $0x80] sm:$0xff] }
 0x9a1   :  { %8687 = vmatprep.subr.bf16.mxu0 %v9151_v3 }
 0x9a4   :  { %8689 = vmatpush3.bf16.msra.mxu0 %v9376_v37  ;;  %v4608_v37 = vld [vmem:[#allocation6 + $0x90] sm:$0xff] }
 0x9a5   :  { %8690 = vmatprep.subr.bf16.mxu0 %v9151_v3 }
 0x9a8   :  { %8692 = vmatpush3.bf16.msra.mxu0 %v9381_v38  ;;  %v4624_v38 = vand.u32 4294901760, %v4606_v39 }
 0x9a9   :  { %8693 = vmatprep.subr.bf16.mxu0 %v9151_v3 }
 0x9aa   :  { %v10161_v19 = vsub.f32 %v4606_v39, %v4624_v38 }
 0x9ac   :  { %8695 = vmatpush3.bf16.msra.mxu0 %v9389_v9  ;;  %v4627_v9 = vand.u32 4294901760, %v4607_v48  ;;  %v4717_v8 = vand.u32 4294901760, %v10161_v19 }
 0x9ad   :  { %8696 = vmatprep.subr.bf16.mxu0 %v9151_v3 }
 0x9ae   :  { %v10163_v5 = vsub.f32 %v4607_v48, %v4627_v9  ;;  %v4718_v17 = vsub.f32 %v10161_v19, %v4717_v8 }
 0x9b0   :  { %8698 = vmatpush3.bf16.msra.mxu0 %v9395_v16  ;;  %v4609_v16 = vld [vmem:[#allocation6 + $0x98] sm:$0xff]  ;;  %v4719_v48 = vand.u32 4294901760, %v4718_v17 }
 0x9b1   :  { %8699 = vmatprep.subr.bf16.mxu0 %v9151_v3  ;;  %v4633_v2 = vand.u32 4294901760, %v4609_v16 }
 0x9b3   :  { %v10167_v54 = vsub.f32 %v4609_v16, %v4633_v2 }
 0x9b4   :  { %8701 = vmatpush3.bf16.msra.mxu0 %v9400_v4  ;;  %v4630_v4 = vand.u32 4294901760, %v4608_v37 }
 0x9b5   :  { %8702 = vmatprep.subr.bf16.mxu0 %v9151_v3 }
 0x9b6   :  { %v10165_v21 = vsub.f32 %v4608_v37, %v4630_v4 }
 0x9b8   :  { %8704 = vmatpush3.bf16.msra.mxu0 %v9404_v32  ;;  %v10159_v32 = vpack.c.bf16 %v4627_v9, %v4624_v38  ;;  %v4731_v38 = vand.u32 4294901760, %v10165_v21  ;;  %v4738_v9 = vand.u32 4294901760, %v10167_v54 }
 0x9b9   :  { %8705 = vmatprep.subr.bf16.mxu0 %v9151_v3 }
 0x9ba   :  { %8803 = vmatpush3.bf16.msra.mxu1 %v10159_v32 }
 0x9bb   :  { %7441 = vmatmul.mubr.f32.vlgmr.msra.gmra.mrb[6].mxu0 %v10124_v14  ;;  %8804 = vmatprep.subr.bf16.mxu1 %v9151_v3 }
 0x9bc   :  { %8707 = vmatpush3.bf16.msra.mxu0 %v9410_v33  ;;  %7475 = vmatprep.mubr.msk.f32.mxu0 %vm9152_vm0, %v10518_v35  ;;  %v10171_v33 = vpack.c.bf16 %v4633_v2, %v4630_v4  ;;  %v4732_v4 = vsub.f32 %v10165_v21, %v4731_v38  ;;  %v4739_v2 = vsub.f32 %v10167_v54, %v4738_v9 }
 0x9bd   :  { %8708 = vmatprep.subr.bf16.mxu0 %v9151_v3 }
 0x9be   :  { %8806 = vmatpush3.bf16.msra.mxu1 %v10171_v33 }
 0x9bf   :  { %8807 = vmatprep.subr.bf16.mxu1 %v9151_v3 }
 0x9c0   :  { %8710 = vmatpush3.bf16.msra.mxu0 %v9417_v36  ;;  %v4617_v36 = vld [vmem:[#allocation6 + $0xd8] sm:$0xff] }
 0x9c1   :  { %8711 = vmatprep.subr.bf16.mxu0 %v9151_v3 }
 0x9c4   :  { %8713 = vmatpush3.bf16.msra.mxu0 %v9425_v41 }
 0x9c5   :  { %8714 = vmatprep.subr.bf16.mxu0 %v9151_v3 }
 0x9c8   :  { %8716 = vmatpush3.bf16.msra.mxu0 %v9431_v43  ;;  %v4657_v43 = vand.u32 4294901760, %v4617_v36 }
 0x9c9   :  { %8717 = vmatprep.subr.bf16.mxu0 %v9151_v3 }
 0x9ca   :  { %v10277_v31 = vsub.f32 %v4617_v36, %v4657_v43 }
 0x9cc   :  { %8719 = vmatpush3.bf16.msra.mxu0 %v9437_v49  ;;  %v10511_v17 = vand.u32 4294901760, %v10277_v31 }
 0x9cd   :  { %8720 = vmatprep.subr.bf16.mxu0 %v9151_v3 }
 0x9d0   :  { %8722 = vmatpush3.bf16.msra.mxu0 %v9443_v50  ;;  %v4618_v50 = vld [vmem:[#allocation6 + $0xe0] sm:$0xff] }
 0x9d1   :  { %8723 = vmatprep.subr.bf16.mxu0 %v9151_v3 }
 0x9d4   :  { %8725 = vmatpush3.bf16.msra.mxu0 %v9449_v52  ;;  %v4619_v52 = vld [vmem:[#allocation6 + $0xe8] sm:$0xff] }
 0x9d5   :  { %8726 = vmatprep.subr.bf16.mxu0 %v9151_v3  ;;  %v4663_v56 = vand.u32 4294901760, %v4619_v52 }
 0x9d7   :  { %v10283_v7 = vsub.f32 %v4619_v52, %v4663_v56 }
 0x9d8   :  { %8728 = vmatpush3.bf16.msra.mxu0 %v9455_v53  ;;  %v4660_v53 = vand.u32 4294901760, %v4618_v50 }
 0x9d9   :  { %8729 = vmatprep.subr.bf16.mxu0 %v9151_v3 }
 0x9da   :  { %v10279_v6 = vpack.c.bf16 %v4663_v56, %v4660_v53  ;;  %v10281_v23 = vsub.f32 %v4618_v50, %v4660_v53 }
 0x9db   :  { %7476 = vmatmul.mubr.f32.vlgmr.msra.gmra.mrb[6].mxu0 %v10130_v62  ;;  %v10288_v62 = vsub.f32 %v4620_v61, %v4666_v45 }
 0x9dc   :  { %8731 = vmatpush3.bf16.msra.mxu0 %v9218_v12  ;;  %7510 = vmatprep.mubr.msk.f32.mxu0 %vm9152_vm0, %v10518_v35 }
 0x9dd   :  { %8732 = vmatprep.subr.bf16.mxu0 %v9151_v3 }
 0x9e0   :  { %8734 = vmatpush3.bf16.msra.mxu0 %v9223_v13 }
 0x9e1   :  { %8735 = vmatprep.subr.bf16.mxu0 %v9151_v3 }
 0x9e4   :  { %8737 = vmatpush3.bf16.msra.mxu0 %v9231_v18 }
 0x9e5   :  { %8738 = vmatprep.subr.bf16.mxu0 %v9151_v3 }
 0x9e8   :  { %8740 = vmatpush3.bf16.msra.mxu0 %v9241_v28 }
 0x9e9   :  { %8741 = vmatprep.subr.bf16.mxu0 %v9151_v3 }
 0x9ec   :  { %8743 = vmatpush3.bf16.msra.mxu0 %v9251_v42 }
 0x9ed   :  { %8744 = vmatprep.subr.bf16.mxu0 %v9151_v3 }
 0x9f0   :  { %8746 = vmatpush3.bf16.msra.mxu0 %v9258_v46 }
 0x9f1   :  { %8747 = vmatprep.subr.bf16.mxu0 %v9151_v3 }
 0x9f4   :  { %8749 = vmatpush3.bf16.msra.mxu0 %v9260_v47 }
 0x9f5   :  { %8750 = vmatprep.subr.bf16.mxu0 %v9151_v3 }
 0x9f8   :  { %8752 = vmatpush3.bf16.msra.mxu0 %v9283_v55 }
 0x9f9   :  { %8753 = vmatprep.subr.bf16.mxu0 %v9151_v3 }
 0x9fb   :  { %7511 = vmatmul.mubr.f32.vlgmr.msra.gmra.mrb[6].mxu0 %v4046_v63  ;;  %v10291_v63 = vpack.c.bf16 %v4669_v51, %v4666_v45 }
 0x9fc   :  { %8755 = vmatpush3.bf16.msra.mxu0 %v9327_v22  ;;  %7545 = vmatprep.mubr.msk.f32.mxu0 %vm9152_vm0, %v10518_v35 }
 0x9fd   :  { %8756 = vmatprep.subr.bf16.mxu0 %v9151_v3 }
 0xa00   :  { %8758 = vmatpush3.bf16.msra.mxu0 %v9329_v24  ;;  %v4613_v24 = vld [vmem:[#allocation6 + $0xb8] sm:$0xff] }
 0xa01   :  { %8759 = vmatprep.subr.bf16.mxu0 %v9151_v3 }
 0xa04   :  { %8761 = vmatpush3.bf16.msra.mxu0 %v9332_v25  ;;  %v4645_v25 = vand.u32 4294901760, %v4613_v24 }
 0xa05   :  { %8762 = vmatprep.subr.bf16.mxu0 %v9151_v3 }
 0xa06   :  { %v10269_v60 = vsub.f32 %v4613_v24, %v4645_v25 }
 0xa08   :  { %8764 = vmatpush3.bf16.msra.mxu0 %v9334_v27  ;;  %v4614_v27 = vld [vmem:[#allocation6 + $0xc0] sm:$0xff] }
 0xa09   :  { %8765 = vmatprep.subr.bf16.mxu0 %v9151_v3 }
 0xa0c   :  { %8767 = vmatpush3.bf16.msra.mxu0 %v9336_v29  ;;  %v4648_v29 = vand.u32 4294901760, %v4614_v27 }
 0xa0d   :  { %8768 = vmatprep.subr.bf16.mxu0 %v9151_v3 }
 0xa0e   :  { %v10271_v10 = vsub.f32 %v4614_v27, %v4648_v29 }
 0xa10   :  { %8770 = vmatpush3.bf16.msra.mxu0 %v9338_v30  ;;  %v10514_v50 = vand.u32 4294901760, %v10271_v10 }
 0xa11   :  { %8771 = vmatprep.subr.bf16.mxu0 %v9151_v3 }
 0xa12   :  { %v4774_v56 = vsub.f32 %v10271_v10, %v10514_v50 }
 0xa14   :  { %8773 = vmatpush3.bf16.msra.mxu0 %v9347_v34  ;;  %v4775_v1 = vand.u32 4294901760, %v4774_v56 }
 0xa15   :  { %8774 = vmatprep.subr.bf16.mxu0 %v9151_v3 }
 0xa18   :  { %8776 = vmatpush3.bf16.msra.mxu0 %v9354_v40  ;;  %v4616_v40 = vld [vmem:[#allocation6 + $0xd0] sm:$0xff] }
 0xa19   :  { %8777 = vmatprep.subr.bf16.mxu0 %v9151_v3  ;;  %v4654_v41 = vand.u32 4294901760, %v4616_v40 }
 0xa1b   :  { %7546 = vmatmul.mubr.f32.vlgmr.msra.gmra.mrb[6].mxu0 %v10124_v14  ;;  %v10259_v49 = vpack.c.bf16 %v4657_v43, %v4654_v41  ;;  %v10275_v20 = vsub.f32 %v4616_v40, %v4654_v41 }
 0xa1c   :  { %8779 = vmatpush3.bf16.msra.mxu0 %v9218_v12  ;;  %7580 = vmatprep.mubr.msk.f32.mxu0 %vm9152_vm0, %v10518_v35  ;;  %v4610_v12 = vld [vmem:[#allocation6 + $0xa0] sm:$0xff] }
 0xa1d   :  { %8780 = vmatprep.subr.bf16.mxu0 %v9151_v3  ;;  %v10512_v51 = vand.u32 4294901760, %v10275_v20 }
 0xa20   :  { %8782 = vmatpush3.bf16.msra.mxu0 %v9223_v13  ;;  %v4611_v13 = vld [vmem:[#allocation6 + $0xa8] sm:$0xff] }
 0xa21   :  { %8783 = vmatprep.subr.bf16.mxu0 %v9151_v3 }
 0xa24   :  { %8785 = vmatpush3.bf16.msra.mxu0 %v9231_v18  ;;  %v4636_v18 = vand.u32 4294901760, %v4610_v12 }
 0xa25   :  { %8786 = vmatprep.subr.bf16.mxu0 %v9151_v3 }
 0xa26   :  { %v10263_v57 = vsub.f32 %v4610_v12, %v4636_v18  ;;  %v4733_v12 = vand.u32 4294901760, %v4732_v4 }
 0xa28   :  { %8788 = vmatpush3.bf16.msra.mxu0 %v9241_v28  ;;  %v4639_v28 = vand.u32 4294901760, %v4611_v13 }
 0xa29   :  { %8789 = vmatprep.subr.bf16.mxu0 %v9151_v3 }
 0xa2a   :  { %v10247_v22 = vpack.c.bf16 %v4639_v28, %v4636_v18  ;;  %v10265_v58 = vsub.f32 %v4611_v13, %v4639_v28  ;;  %v4740_v13 = vand.u32 4294901760, %v4739_v2  ;;  %v4745_v18 = vand.u32 4294901760, %v10263_v57 }
 0xa2c   :  { %8791 = vmatpush3.bf16.msra.mxu0 %v9251_v42  ;;  %v4612_v42 = vld [vmem:[#allocation6 + $0xb0] sm:$0xff]  ;;  %8809 = vmatpush3.bf16.msra.mxu1 %v10247_v22  ;;  %v4752_v28 = vand.u32 4294901760, %v10265_v58  ;;  %v4746_v24 = vsub.f32 %v10263_v57, %v4745_v18 }
 0xa2d   :  { %8792 = vmatprep.subr.bf16.mxu0 %v9151_v3  ;;  %8810 = vmatprep.subr.bf16.mxu1 %v9151_v3 }
 0xa30   :  { %8794 = vmatpush3.bf16.msra.mxu0 %v9258_v46  ;;  %v4642_v46 = vand.u32 4294901760, %v4612_v42 }
 0xa31   :  { %8795 = vmatprep.subr.bf16.mxu0 %v9151_v3 }
 0xa32   :  { %v10267_v59 = vsub.f32 %v4612_v42, %v4642_v46  ;;  %v10315_v42 = vpack.c.bf16 %v4740_v13, %v4733_v12  ;;  %v10510_v12 = vand.u32 4294901760, %v10281_v23  ;;  %v10509_v13 = vand.u32 4294901760, %v10283_v7 }
 0xa34   :  { %8797 = vmatpush3.bf16.msra.mxu0 %v9260_v47  ;;  %v10251_v47 = vpack.c.bf16 %v4645_v25, %v4642_v46  ;;  %v4753_v46 = vsub.f32 %v10265_v58, %v4752_v28  ;;  %v4747_v25 = vand.u32 4294901760, %v4746_v24 }
 0xa35   :  { %8798 = vmatprep.subr.bf16.mxu0 %v9151_v3 }
 0xa36   :  { %8812 = vmatpush3.bf16.msra.mxu1 %v10251_v47  ;;  %v4754_v27 = vand.u32 4294901760, %v4753_v46  ;;  %v4802_v46 = vsub.f32 %v10281_v23, %v10510_v12 }
 0xa37   :  { %8813 = vmatprep.subr.bf16.mxu1 %v9151_v3 }
 0xa38   :  { %8800 = vmatpush3.bf16.msra.mxu0 %v9283_v55  ;;  %v4615_v55 = vld [vmem:[#allocation6 + $0xc8] sm:$0xff] }
 0xa39   :  { %v4651_v30 = vand.u32 4294901760, %v4615_v55 }
 0xa3b   :  { %7581 = vmatmul.mubr.f32.vlgmr.msra.gmra.mrb[6].mxu0 %v10124_v14  ;;  %v10255_v34 = vpack.c.bf16 %v4651_v30, %v4648_v29  ;;  %v10273_v11 = vsub.f32 %v4615_v55, %v4651_v30  ;;  %v4724_v14 = vand.u32 4294901760, %v10163_v5  ;;  %v10516_v55 = vand.u32 4294901760, %v10267_v59 }
 0xa3c   :  { %v10515_v29 = vand.u32 4294901760, %v10269_v60  ;;  %v8832_v30 = vpack.c.bf16 %v4754_v27, %v4747_v25  ;;  %v4809_v25 = vsub.f32 %v10283_v7, %v10509_v13  ;;  %v4803_v27 = vand.u32 4294901760, %v4802_v46 }
 0xa3d   :  { %8815 = vmatpush3.bf16.msra.mxu1 %v10255_v34  ;;  %v4725_v39 = vsub.f32 %v10163_v5, %v4724_v14  ;;  %v4760_v40 = vsub.f32 %v10267_v59, %v10516_v55  ;;  %v10513_v52 = vand.u32 4294901760, %v10273_v11  ;;  %v8859_v46 = vpack.c.bf16 %v10269_v60, %v10267_v59 }
 0xa3e   :  { %8816 = vmatprep.subr.bf16.mxu1 %v9151_v3  ;;  %v4767_v36 = vsub.f32 %v10269_v60, %v10515_v29 }
 0xa3f   :  { %v4726_v37 = vand.u32 4294901760, %v4725_v39  ;;  %v4761_v41 = vand.u32 4294901760, %v4760_v40  ;;  %v4781_v61 = vsub.f32 %v10273_v11, %v10513_v52  ;;  %v4810_v40 = vand.u32 4294901760, %v4809_v25 }
 0xa40   :  { %v4768_v43 = vand.u32 4294901760, %v4767_v36  ;;  %v10508_v36 = vand.u32 4294901760, %v10288_v62  ;;  %v8862_v25 = vpack.c.bf16 %v10273_v11, %v10271_v10 }
 0xa41   :  { %8818 = vmatpush3.bf16.msra.mxu1 %v10259_v49  ;;  %v10305_v16 = vpack.c.bf16 %v4726_v37, %v4719_v48  ;;  %v4782_v45 = vand.u32 4294901760, %v4781_v61  ;;  %v4788_v48 = vsub.f32 %v10275_v20, %v10512_v51  ;;  %v4795_v37 = vsub.f32 %v10277_v31, %v10511_v17 }
 0xa42   :  { %8819 = vmatprep.subr.bf16.mxu1 %v9151_v3  ;;  %v8835_v53 = vpack.c.bf16 %v4768_v43, %v4761_v41  ;;  %v10507_v41 = vand.u32 4294901760, %v10293_v0  ;;  %v8844_v43 = vpack.c.bf16 %v4810_v40, %v4803_v27  ;;  %v4816_v56 = vsub.f32 %v10288_v62, %v10508_v36 }
 0xa43   :  { %v8838_v39 = vpack.c.bf16 %v4782_v45, %v4775_v1  ;;  %v4789_v4 = vand.u32 4294901760, %v4788_v48  ;;  %v4796_v2 = vand.u32 4294901760, %v4795_v37  ;;  %v8850_v37 = vpack.c.bf16 %v10163_v5, %v10161_v19 }
 0xa44   :  { %v4823_v61 = vsub.f32 %v10293_v0, %v10507_v41  ;;  %v4817_v1 = vand.u32 4294901760, %v4816_v56  ;;  %v8865_v27 = vpack.c.bf16 %v10277_v31, %v10275_v20  ;;  %v8868_v40 = vpack.c.bf16 %v10283_v7, %v10281_v23 }
 0xa45   :  { %8821 = vmatpush3.bf16.msra.mxu1 %v10279_v6  ;;  %v8841_v24 = vpack.c.bf16 %v4796_v2, %v4789_v4  ;;  %v8853_v4 = vpack.c.bf16 %v10167_v54, %v10165_v21  ;;  %v8856_v2 = vpack.c.bf16 %v10265_v58, %v10263_v57  ;;  %v8871_v56 = vpack.c.bf16 %v10293_v0, %v10288_v62 }
 0xa46   :  { %8822 = vmatprep.subr.bf16.mxu1 %v9151_v3  ;;  %v4824_v45 = vand.u32 4294901760, %v4823_v61  ;;  %v3960_v61 = vstv %s5296_s20  ;;  %v10521_v19 = vand.u32 4294901760, %v10267_v59  ;;  %v10522_v5 = vand.u32 4294901760, %v10269_v60 }
 0xa47   :  { %v10523_v54 = vand.u32 4294901760, %v10271_v10  ;;  %v10525_v57 = vand.u32 4294901760, %v10275_v20  ;;  %v10526_v58 = vand.u32 4294901760, %v10277_v31  ;;  %v10527_v59 = vand.u32 4294901760, %v10281_v23 }
 0xa48   :  { %v8847_v48 = vpack.c.bf16 %v4824_v45, %v4817_v1  ;;  %v3961_v1 = vmul.f32 %v9896_v26, %v3960_v61  ;;  %v8898_v26 = vpack.c.bf16 %v4724_v14, %v4717_v8  ;;  %v8907_v21 = vpack.c.bf16 %v10522_v5, %v10521_v19 }
 0xa49   :  { %8824 = vmatpush3.bf16.msra.mxu1 %v10291_v63  ;;  %v10524_v8 = vand.u32 4294901760, %v10273_v11  ;;  %v10528_v60 = vand.u32 4294901760, %v10283_v7  ;;  %v10529_v10 = vand.u32 4294901760, %v10288_v62  ;;  %v10530_v11 = vand.u32 4294901760, %v10293_v0 }
 0xa4a   :  { %8825 = vmatprep.subr.bf16.mxu1 %v9151_v3  ;;  %v3962_v45 = vadd.f32 %v9899_v44, %v3961_v1  ;;  %v8901_v44 = vpack.c.bf16 %v4738_v9, %v4731_v38  ;;  %v8913_v38 = vpack.c.bf16 %v10526_v58, %v10525_v57 }
 0xa4b   :  { %v8910_v14 = vpack.c.bf16 %v10524_v8, %v10523_v54  ;;  %v8916_v9 = vpack.c.bf16 %v10528_v60, %v10527_v59 }
 0xb0e   :  { %v4600_v41 = vpop.f32.mrb[6].mxu0 }
 0xb0f   :  { %v8951_v36 = vadd.f32 %v4600_v41, %v3962_v45  ;;  %v7582_v13 = vpop.f32.mrb[7].mxu0 }
 0xb11   :  { %9056 = vtanh.f32 %v8951_v36 }
 0xb1b   :  { %v9057_v12 = vpop.eup %9056 }
 0xb1c   :  { %v4605_v17 = vadd.f32 %v9057_v12, %v10127_v15  ;;  %v8904_v15 = vpack.c.bf16 %v4752_v28, %v4745_v18 }
 0xb1e   :  { %v10382_v51 = vand.u32 4294901760, %v4605_v17 }
 0xb20   :  { %v4705_v52 = vsub.f32 %v4605_v17, %v10382_v51 }
 0xb22   :  { %v4706_v50 = vand.u32 4294901760, %v4705_v52 }
 0xb24   :  { %v4707_v29 = vsub.f32 %v4705_v52, %v4706_v50 }
 0xb26   :  { %v4708_v55 = vand.u32 4294901760, %v4707_v29 }
 0xb28   :  { %7616 = vmatmul.mubr.f32.vlgmr.msra.gmra.mrb[6].mxu1 %v4708_v55 }
 0xb29   :  { %8827 = vmatpush3.bf16.msra.mxu1 %v10305_v16  ;;  %7650 = vmatprep.mubr.msk.f32.mxu1 %vm9152_vm0, %v10518_v35  ;;  %v8919_v16 = vpack.c.bf16 %v10530_v11, %v10529_v10 }
 0xb2a   :  { %8828 = vmatprep.subr.bf16.mxu1 %v9151_v3 }
 0xb2d   :  { %8830 = vmatpush3.bf16.msra.mxu1 %v10315_v42 }
 0xb2e   :  { %8831 = vmatprep.subr.bf16.mxu1 %v9151_v3 }
 0xb31   :  { %8833 = vmatpush3.bf16.msra.mxu1 %v8832_v30 }
 0xb32   :  { %8834 = vmatprep.subr.bf16.mxu1 %v9151_v3 }
 0xb35   :  { %8836 = vmatpush3.bf16.msra.mxu1 %v8835_v53 }
 0xb36   :  { %8837 = vmatprep.subr.bf16.mxu1 %v9151_v3 }
 0xb39   :  { %8839 = vmatpush3.bf16.msra.mxu1 %v8838_v39 }
 0xb3a   :  { %8840 = vmatprep.subr.bf16.mxu1 %v9151_v3 }
 0xb3d   :  { %8842 = vmatpush3.bf16.msra.mxu1 %v8841_v24 }
 0xb3e   :  { %8843 = vmatprep.subr.bf16.mxu1 %v9151_v3 }
 0xb41   :  { %8845 = vmatpush3.bf16.msra.mxu1 %v8844_v43 }
 0xb42   :  { %8846 = vmatprep.subr.bf16.mxu1 %v9151_v3 }
 0xb45   :  { %8848 = vmatpush3.bf16.msra.mxu1 %v8847_v48 }
 0xb46   :  { %8849 = vmatprep.subr.bf16.mxu1 %v9151_v3 }
 0xb48   :  { %7651 = vmatmul.mubr.f32.vlgmr.msra.gmra.mrb[6].mxu1 %v10382_v51 }
 0xb49   :  { %8851 = vmatpush3.bf16.msra.mxu1 %v8850_v37  ;;  %7685 = vmatprep.mubr.msk.f32.mxu1 %vm9152_vm0, %v10518_v35 }
 0xb4a   :  { %8852 = vmatprep.subr.bf16.mxu1 %v9151_v3 }
 0xb4d   :  { %8854 = vmatpush3.bf16.msra.mxu1 %v8853_v4 }
 0xb4e   :  { %8855 = vmatprep.subr.bf16.mxu1 %v9151_v3 }
 0xb51   :  { %8857 = vmatpush3.bf16.msra.mxu1 %v8856_v2 }
 0xb52   :  { %8858 = vmatprep.subr.bf16.mxu1 %v9151_v3 }
 0xb55   :  { %8860 = vmatpush3.bf16.msra.mxu1 %v8859_v46 }
 0xb56   :  { %8861 = vmatprep.subr.bf16.mxu1 %v9151_v3 }
 0xb59   :  { %8863 = vmatpush3.bf16.msra.mxu1 %v8862_v25 }
 0xb5a   :  { %8864 = vmatprep.subr.bf16.mxu1 %v9151_v3 }
 0xb5d   :  { %8866 = vmatpush3.bf16.msra.mxu1 %v8865_v27 }
 0xb5e   :  { %8867 = vmatprep.subr.bf16.mxu1 %v9151_v3 }
 0xb61   :  { %8869 = vmatpush3.bf16.msra.mxu1 %v8868_v40 }
 0xb62   :  { %8870 = vmatprep.subr.bf16.mxu1 %v9151_v3 }
 0xb65   :  { %8872 = vmatpush3.bf16.msra.mxu1 %v8871_v56 }
 0xb66   :  { %8873 = vmatprep.subr.bf16.mxu1 %v9151_v3 }
 0xb68   :  { %7686 = vmatmul.mubr.f32.vlgmr.msra.gmra.mrb[6].mxu1 %v4705_v52 }
 0xb69   :  { %8875 = vmatpush3.bf16.msra.mxu1 %v10159_v32  ;;  %7720 = vmatprep.mubr.msk.f32.mxu1 %vm9152_vm0, %v10518_v35 }
 0xb6a   :  { %8876 = vmatprep.subr.bf16.mxu1 %v9151_v3 }
 0xb6d   :  { %8878 = vmatpush3.bf16.msra.mxu1 %v10171_v33 }
 0xb6e   :  { %8879 = vmatprep.subr.bf16.mxu1 %v9151_v3 }
 0xb71   :  { %8881 = vmatpush3.bf16.msra.mxu1 %v10247_v22 }
 0xb72   :  { %8882 = vmatprep.subr.bf16.mxu1 %v9151_v3 }
 0xb75   :  { %8884 = vmatpush3.bf16.msra.mxu1 %v10251_v47 }
 0xb76   :  { %8885 = vmatprep.subr.bf16.mxu1 %v9151_v3 }
 0xb79   :  { %8887 = vmatpush3.bf16.msra.mxu1 %v10255_v34 }
 0xb7a   :  { %8888 = vmatprep.subr.bf16.mxu1 %v9151_v3 }
 0xb7d   :  { %8890 = vmatpush3.bf16.msra.mxu1 %v10259_v49 }
 0xb7e   :  { %8891 = vmatprep.subr.bf16.mxu1 %v9151_v3 }
 0xb81   :  { %8893 = vmatpush3.bf16.msra.mxu1 %v10279_v6 }
 0xb82   :  { %8894 = vmatprep.subr.bf16.mxu1 %v9151_v3 }
 0xb85   :  { %8896 = vmatpush3.bf16.msra.mxu1 %v10291_v63 }
 0xb86   :  { %8897 = vmatprep.subr.bf16.mxu1 %v9151_v3 }
 0xb88   :  { %7721 = vmatmul.mubr.f32.vlgmr.msra.gmra.mrb[6].mxu1 %v4706_v50 }
 0xb89   :  { %8899 = vmatpush3.bf16.msra.mxu1 %v8898_v26  ;;  %7755 = vmatprep.mubr.msk.f32.mxu1 %vm9152_vm0, %v10518_v35 }
 0xb8a   :  { %8900 = vmatprep.subr.bf16.mxu1 %v9151_v3 }
 0xb8d   :  { %8902 = vmatpush3.bf16.msra.mxu1 %v8901_v44 }
 0xb8e   :  { %8903 = vmatprep.subr.bf16.mxu1 %v9151_v3 }
 0xb91   :  { %8905 = vmatpush3.bf16.msra.mxu1 %v8904_v15 }
 0xb92   :  { %8906 = vmatprep.subr.bf16.mxu1 %v9151_v3 }
 0xb95   :  { %8908 = vmatpush3.bf16.msra.mxu1 %v8907_v21 }
 0xb96   :  { %8909 = vmatprep.subr.bf16.mxu1 %v9151_v3 }
 0xb99   :  { %8911 = vmatpush3.bf16.msra.mxu1 %v8910_v14 }
 0xb9a   :  { %8912 = vmatprep.subr.bf16.mxu1 %v9151_v3 }
 0xb9d   :  { %8914 = vmatpush3.bf16.msra.mxu1 %v8913_v38 }
 0xb9e   :  { %8915 = vmatprep.subr.bf16.mxu1 %v9151_v3 }
 0xba1   :  { %8917 = vmatpush3.bf16.msra.mxu1 %v8916_v9 }
 0xba2   :  { %8918 = vmatprep.subr.bf16.mxu1 %v9151_v3 }
 0xba5   :  { %8920 = vmatpush3.bf16.msra.mxu1 %v8919_v16 }
 0xba6   :  { %8921 = vmatprep.subr.bf16.mxu1 %v9151_v3 }
 0xba8   :  { %7756 = vmatmul.mubr.f32.vlgmr.msra.gmra.mrb[6].mxu1 %v10382_v51 }
 0xba9   :  { %8923 = vmatpush3.bf16.msra.mxu1 %v10159_v32  ;;  %7790 = vmatprep.mubr.msk.f32.mxu1 %vm9152_vm0, %v10518_v35  ;;  %v4622_v35 = vld [vmem:[#allocation7 + $0x2] sm:$0x1] }
 0xbaa   :  { %8924 = vmatprep.subr.bf16.mxu1 %v9151_v3 }
 0xbad   :  { %8926 = vmatpush3.bf16.msra.mxu1 %v10171_v33 }
 0xbae   :  { %8927 = vmatprep.subr.bf16.mxu1 %v9151_v3 }
 0xbb1   :  { %8929 = vmatpush3.bf16.msra.mxu1 %v10247_v22 }
 0xbb2   :  { %8930 = vmatprep.subr.bf16.mxu1 %v9151_v3 }
 0xbb5   :  { %8932 = vmatpush3.bf16.msra.mxu1 %v10251_v47  ;;  %v5265_v47 = vld [vmem:[#allocation7 + $0x3] sm:$0x1] }
 0xbb6   :  { %8933 = vmatprep.subr.bf16.mxu1 %v9151_v3 }
 0xbb9   :  { %8935 = vmatpush3.bf16.msra.mxu1 %v10255_v34 }
 0xbba   :  { %8936 = vmatprep.subr.bf16.mxu1 %v9151_v3 }
 0xbbd   :  { %8938 = vmatpush3.bf16.msra.mxu1 %v10259_v49 }
 0xbbe   :  { %8939 = vmatprep.subr.bf16.mxu1 %v9151_v3 }
 0xbc1   :  { %8941 = vmatpush3.bf16.msra.mxu1 %v10279_v6 }
 0xbc2   :  { %8942 = vmatprep.subr.bf16.mxu1 %v9151_v3 }
 0xbc5   :  { %8944 = vmatpush3.bf16.msra.mxu1 %v10291_v63 }
 0xbc8   :  { %7791 = vmatmul.mubr.f32.vlgmr.msra.gmra.mrb[6].mxu1 %v10382_v51 }
 0xc9b   :  { %v5260_v32 = vpop.f32.mrb[6].mxu1 }
 0xc9c   :  { %v8952_v33 = vadd.f32 %v5260_v32, %v4622_v35  ;;  %v7792_v22 = vpop.f32.mrb[7].mxu1 }
 0xc9e   :  { %v5264_v34 = vmax.f32 %v8952_v33, 0.0 }
 0xca0   :  { %v5266_v20 = vmul.f32 %v5265_v47, %v5264_v34 }
 0xca2   :  { %v5268_v31 = vsel %vm5267_vm1, %v5266_v20, 0.0 }
 0xca3   :  { %5269 = vadd.xlane.f32.xlu0 %v5268_v31 }
 0xd30   :  { %v5270_v49 = vpop.xlane.xlu0 %5269 }
 0xd31   :  { %5272 = vst.msk [vmem:[#allocation9] sm:$0x1] %vm5271_vm2, %v5270_v49 }
 0xd32   :  { %9127 = shalt.err (!%p9124_p11)
}
 0xd33   :  { %s9128_s26 = scalar_lea.hbm %s10502_s3, 16 }
 0xd34   :  { %p9129_p12 = scmp.ne.s32.totalorder %s10502_s3, %s9128_s26  ;;  %p9132_p13 = scmp.lt.u32.totalorder %s9128_s26, %s10502_s3 }
 0xd36   :  { %p9134_p0 = pnand %p9132_p13, %p9129_p12 }
 0xd38   :  { %9137 = shalt.err (!%p9134_p0)
}
 0xd39   :  { %5282 = dma.vmem_to_hbm [thread:$0]  %s5280_s22, 16, %s10502_s3, [#allocation4]  }
 0xd3a   :  { %9144 = dma.done.wait [#allocation4], 16  }
 0xd3b   :  { %9145 = vsyncadd [#allocation4], 4294967280 }
 0xd3c   :  { %5286 = vsyncpa [#allocation3], 1 }
 0xd3d   :  { %5287 = vsyncpa [#allocation8], 1 }
 0xd3e   :  { %5288 = vsyncpa [#allocation4], 1 }
 0xd3f   :  { %5289 = vsyncpa [#allocation5], 1 }

</bundles_post_ra>
